<compile_context>
chip_gen: v7x
topology: tpu7x:2x2x1
jax: 0.10.0
libtpu: 0.0.40
codegen_flags: <defaults>
</compile_context>

<pallas_src>
import jax
import jax.numpy as jnp
from jax.experimental import pallas as pl
from jax.experimental.pallas import tpu as pltpu

EPS = 1e-5
NEG_SLOPE = 0.2
VMEM_LIMIT = 32 * 1024 * 1024  # explicit, safe on v5e/v6e/v7x


# ----------------------------- kernel helpers ------------------------------ #

def _leaky(y):
    return jnp.where(y >= 0.0, y, NEG_SLOPE * y)


def _sigmoid(y):
    # numerically stable: exp(-|y|) never overflows
    e = jnp.exp(-jnp.abs(y))
    return jnp.where(y >= 0.0, 1.0 / (1.0 + e), e / (1.0 + e))


def _batchnorm(y, gamma, beta):
    # Training-mode BatchNorm2d: stats over (N, H, W) == the M (lane) axis.
    # One pass: sum + sum-of-squares, biased variance, rsqrt on the EUP.
    inv_m = 1.0 / y.shape[1]
    s1 = jnp.sum(y, axis=1, keepdims=True)
    s2 = jnp.sum(y * y, axis=1, keepdims=True)
    mean = s1 * inv_m
    var = jnp.maximum(s2 * inv_m - mean * mean, 0.0)
    return (y - mean) * (jax.lax.rsqrt(var + EPS) * gamma) + beta


# -------------------------------- kernels ---------------------------------- #

def _conv_lrelu_kernel(w_ref, x_ref, o_ref):
    # (Cout, K) @ (K, TILE_M) -> (Cout, TILE_M); lane-dense output.
    y = jnp.dot(w_ref[...], x_ref[...], preferred_element_type=jnp.float32)
    o_ref[...] = _leaky(y).astype(o_ref.dtype)


def _conv_bn_lrelu_kernel(w_ref, x_ref, g_ref, b_ref, o_ref):
    y = jnp.dot(w_ref[...], x_ref[...], preferred_element_type=jnp.float32)
    y = _batchnorm(y, g_ref[...], b_ref[...])
    o_ref[...] = _leaky(y).astype(o_ref.dtype)


def _conv4_conv5_kernel(w4_ref, x_ref, g_ref, b_ref, w5_ref, sel_ref, o_ref):
    # Layer 4: conv + BN + LeakyReLU; activation never leaves VMEM.
    y = jnp.dot(w4_ref[...], x_ref[...], preferred_element_type=jnp.float32)  # (C4, M4)
    a4 = _leaky(_batchnorm(y, g_ref[...], b_ref[...]))
    # Layer 5: Conv2d(C4, 1, 4, 1, 0) over the full 4x4 window + Sigmoid,
    # expressed as elementwise-mul + reductions so everything stays in the
    # (C, M) layout (no in-kernel reshape/transpose).
    prod = w5_ref[...] * a4                                  # (C4, M4)
    col = jnp.sum(prod, axis=0, keepdims=True)               # (1, M4)
    y5 = jnp.sum(sel_ref[...] * col, axis=1, keepdims=True)  # (N, 1)
    o_ref[...] = _sigmoid(y5)


# ------------------------------ JAX-side glue ------------------------------ #

def _im2col_cnhw(x, k, stride, pad):
    """x: (C, N, H, W) -> (C*k*k, N*Ho*Wo).

    Rows ordered (c, kh, kw) to match PyTorch weight.reshape(Cout, C*k*k);
    columns ordered (n, ho, wo).  Pure pad + strided slice + reshape — no
    transposes anywhere between layers."""
    if pad > 0:
        x = jnp.pad(x, ((0, 0), (0, 0), (pad, pad), (pad, pad)))
    C, N, H, W = x.shape
    Ho = (H - k) // stride + 1
    Wo = (W - k) // stride + 1
    cols = []
    for i in range(k):
        for j in range(k):
            cols.append(x[:, :, i:i + stride * (Ho - 1) + 1:stride,
                             j:j + stride * (Wo - 1) + 1:stride])
    p = jnp.stack(cols, axis=1)                     # (C, k*k, N, Ho, Wo)
    return p.reshape(C * k * k, N * Ho * Wo), Ho, Wo


def _conv_layer(x_cnhw, w, stride, pad, *, bn=None, tile_m=None):
    """Fused Conv2d(bias=False) [+ BatchNorm2d] + LeakyReLU(0.2), CNHW layout."""
    Cout, _, k, _ = w.shape
    N = x_cnhw.shape[1]
    patches, Ho, Wo = _im2col_cnhw(x_cnhw, k, stride, pad)
    K, M = patches.shape
    patches = patches.astype(jnp.bfloat16)
    wm = w.reshape(Cout, K).astype(jnp.bfloat16)

    tm = M
    if tile_m is not None and M > tile_m and M % tile_m == 0:
        tm = tile_m
    grid = (M // tm,)

    if bn is None:
        y = pl.pallas_call(
            _conv_lrelu_kernel,
            out_shape=jax.ShapeDtypeStruct((Cout, M), jnp.bfloat16),
            grid=grid,
            in_specs=[
                pl.BlockSpec((Cout, K), lambda i: (0, 0)),
                pl.BlockSpec((K, tm), lambda i: (0, i)),
            ],
            out_specs=pl.BlockSpec((Cout, tm), lambda i: (0, i)),
            compiler_params=pltpu.CompilerParams(
                dimension_semantics=("parallel",),
                vmem_limit_bytes=VMEM_LIMIT),
        )(wm, patches)
    else:
        gamma, beta = bn
        # BN needs exact batch statistics over all of M -> single full-M block
        # (M is small for these layers: 512 / 128 at the test sizes).
        y = pl.pallas_call(
            _conv_bn_lrelu_kernel,
            out_shape=jax.ShapeDtypeStruct((Cout, M), jnp.bfloat16),
            grid=(1,),
            in_specs=[
                pl.BlockSpec((Cout, K), lambda i: (0, 0)),
                pl.BlockSpec((K, M), lambda i: (0, 0)),
                pl.BlockSpec((Cout, 1), lambda i: (0, 0)),
                pl.BlockSpec((Cout, 1), lambda i: (0, 0)),
            ],
            out_specs=pl.BlockSpec((Cout, M), lambda i: (0, 0)),
            compiler_params=pltpu.CompilerParams(
                dimension_semantics=("arbitrary",),
                vmem_limit_bytes=VMEM_LIMIT),
        )(wm, patches, gamma.reshape(Cout, 1), beta.reshape(Cout, 1))

    return y.reshape(Cout, N, Ho, Wo)


def _final_layers(x_cnhw, w4, g4, b4, w5):
    """Fused: Conv(ndf*4->ndf*8,4,2,1)+BN+LeakyReLU then Conv(ndf*8->1,4,1,0)+Sigmoid."""
    C4, _, k, _ = w4.shape
    N = x_cnhw.shape[1]
    patches, Ho, Wo = _im2col_cnhw(x_cnhw, k, 2, 1)        # layer-4 im2col
    K4, M4 = patches.shape                                 # (C3*16, N*Ho*Wo); Ho=Wo=4
    patches = patches.astype(jnp.bfloat16)
    w4m = w4.reshape(C4, K4).astype(jnp.bfloat16)

    win = Ho * Wo                                          # 16
    # Layer-5 weight tiled so that column m = n*16 + (kh*4+kw) sees w5[0,c,kh,kw].
    w5r = w5.reshape(1, C4, win)[0]                        # (C4, 16)
    w5big = jnp.tile(w5r, (1, N)).astype(jnp.float32)      # (C4, M4)
    # Group-selection mask: sel_t[n, m] = 1 iff column m belongs to batch n.
    sel_t = (jnp.arange(N)[:, None]
             == (jnp.arange(M4)[None, :] // win)).astype(jnp.float32)  # (N, M4)

    y = pl.pallas_call(
        _conv4_conv5_kernel,
        out_shape=jax.ShapeDtypeStruct((N, 1), jnp.float32),
        grid=(1,),
        in_specs=[
            pl.BlockSpec((C4, K4), lambda i: (0, 0)),
            pl.BlockSpec((K4, M4), lambda i: (0, 0)),
            pl.BlockSpec((C4, 1), lambda i: (0, 0)),
            pl.BlockSpec((C4, 1), lambda i: (0, 0)),
            pl.BlockSpec((C4, M4), lambda i: (0, 0)),
            pl.BlockSpec((N, M4), lambda i: (0, 0)),
        ],
        out_specs=pl.BlockSpec((N, 1), lambda i: (0, 0)),
        compiler_params=pltpu.CompilerParams(
            dimension_semantics=("arbitrary",),
            vmem_limit_bytes=VMEM_LIMIT),
    )(w4m, patches, g4.reshape(C4, 1), b4.reshape(C4, 1), w5big, sel_t)
    return y.reshape(N, 1, 1, 1)


# ------------------------------ model wrapper ------------------------------ #

def init_params(key, nc, ndf):
    ks = jax.random.split(key, 5)
    return {
        "w1": 0.02 * jax.random.normal(ks[0], (ndf, nc, 4, 4), jnp.float32),
        "w2": 0.02 * jax.random.normal(ks[1], (ndf * 2, ndf, 4, 4), jnp.float32),
        "w3": 0.02 * jax.random.normal(ks[2], (ndf * 4, ndf * 2, 4, 4), jnp.float32),
        "w4": 0.02 * jax.random.normal(ks[3], (ndf * 8, ndf * 4, 4, 4), jnp.float32),
        "w5": 0.02 * jax.random.normal(ks[4], (1, ndf * 8, 4, 4), jnp.float32),
        "g2": jnp.ones((ndf * 2,), jnp.float32), "b2": jnp.zeros((ndf * 2,), jnp.float32),
        "g3": jnp.ones((ndf * 4,), jnp.float32), "b3": jnp.zeros((ndf * 4,), jnp.float32),
        "g4": jnp.ones((ndf * 8,), jnp.float32), "b4": jnp.zeros((ndf * 8,), jnp.float32),
    }


def discriminator_forward(x, p):
    # NCHW -> CNHW once; afterwards every layer keeps channels leading and
    # M = N*Ho*Wo on the lane axis (no further layout transposes).
    h = jnp.transpose(x, (1, 0, 2, 3))
    # Conv2d(nc, ndf, 4, 2, 1) + LeakyReLU(0.2)   -- M-tiled, "parallel" grid
    h = _conv_layer(h, p["w1"], 2, 1, bn=None, tile_m=512)
    # Conv + BatchNorm + LeakyReLU (x2)
    h = _conv_layer(h, p["w2"], 2, 1, bn=(p["g2"], p["b2"]))
    h = _conv_layer(h, p["w3"], 2, 1, bn=(p["g3"], p["b3"]))
    # Conv + BN + LeakyReLU  fused with  Conv2d(ndf*8, 1, 4, 1, 0) + Sigmoid
    return _final_layers(h, p["w4"], p["g4"], p["b4"], p["w5"])  # (N, 1, 1, 1)


if __name__ == "__main__":
    nc, ndf = 3, 8
    key = jax.random.PRNGKey(0)
    k_param, k_input = jax.random.split(key)
    params = init_params(k_param, nc, ndf)
    x = jax.random.normal(k_input, (2, nc, 64, 64), jnp.float32)

    out = jax.jit(discriminator_forward)(x, params)
    out = jax.block_until_ready(out)

    assert out.shape == (2, 1, 1, 1), out.shape
    assert bool(jnp.all(jnp.isfinite(out)))
    assert bool(jnp.all((out >= 0.0) & (out <= 1.0)))  # sigmoid range
    print("KERNEL_OK")
</pallas_src>

<mosaic_0001>
module attributes {stable_mosaic.version = 11 : i64} {
  func.func @_conv_lrelu_kernel(%arg0: i32, %arg1: memref<8x48xbf16, #tpu.memory_space<vmem>>, %arg2: memref<48x512xbf16, #tpu.memory_space<vmem>>, %arg3: memref<8x512xbf16, #tpu.memory_space<vmem>>) attributes {dimension_semantics = [#tpu.dimension_semantics<parallel>], iteration_bounds = array<i64: 4>, scalar_prefetch = 0 : i64, scratch_operands = 0 : i64, tpu.core_type = #tpu.core_type<tc>, window_params = [{pipeline_mode = #tpu.pipeline_mode<synchronous>, transform_indices = @transform_0, window_bounds = array<i64: 8, 48>}, {transform_indices = @transform_1, window_bounds = array<i64: 48, 512>}, {transform_indices = @transform_2, window_bounds = array<i64: 8, 512>}]} {
    %c0 = arith.constant 0 : index
    %c0_0 = arith.constant 0 : index
    %0 = vector.load %arg1[%c0, %c0_0] : memref<8x48xbf16, #tpu.memory_space<vmem>>, vector<8x48xbf16>
    %c0_1 = arith.constant 0 : index
    %c0_2 = arith.constant 0 : index
    %1 = vector.load %arg2[%c0_1, %c0_2] : memref<48x512xbf16, #tpu.memory_space<vmem>>, vector<48x512xbf16>
    %cst = arith.constant dense<0.000000e+00> : vector<8x512xf32>
    %2 = tpu.matmul %0, %1, %cst {dimension_numbers = #tpu.dot_dimension_numbers<[1], [0], [0], [1], [0, 0, 1, 1], [], []>} : vector<8x48xbf16>, vector<48x512xbf16>, vector<8x512xf32> -> vector<8x512xf32>
    %cst_3 = arith.constant 0.000000e+00 : f32
    %3 = vector.broadcast %cst_3 : f32 to vector<8x512xf32>
    %4 = arith.cmpf oge, %2, %3 : vector<8x512xf32>
    %cst_4 = arith.constant 2.000000e-01 : f32
    %5 = vector.broadcast %cst_4 : f32 to vector<8x512xf32>
    %6 = arith.mulf %5, %2 : vector<8x512xf32>
    %7 = arith.select %4, %2, %6 : vector<8x512xi1>, vector<8x512xf32>
    %8 = arith.truncf %7 : vector<8x512xf32> to vector<8x512xbf16>
    %c0_5 = arith.constant 0 : index
    %c0_6 = arith.constant 0 : index
    %9 = vector.load %arg3[%c0_5, %c0_6] : memref<8x512xbf16, #tpu.memory_space<vmem>>, vector<8x512xbf16>
    tpu.vector_store %arg3[%c0_5, %c0_6], %8 {strides = array<i32>} : memref<8x512xbf16, #tpu.memory_space<vmem>>, vector<8x512xbf16>,
    return
  }
  func.func @transform_0(%arg0: i32) -> (i32, i32) {
    %c0_i32 = arith.constant 0 : i32
    %c0_i32_0 = arith.constant 0 : i32
    %c0_i32_1 = arith.constant 0 : i32
    return %c0_i32, %c0_i32_0 : i32, i32
  }
  func.func @transform_1(%arg0: i32) -> (i32, i32) {
    %c0_i32 = arith.constant 0 : i32
    %c0_i32_0 = arith.constant 0 : i32
    return %c0_i32, %arg0 : i32, i32
  }
  func.func @transform_2(%arg0: i32) -> (i32, i32) {
    %c0_i32 = arith.constant 0 : i32
    %c0_i32_0 = arith.constant 0 : i32
    return %c0_i32, %arg0 : i32, i32
  }
}

module attributes {stable_mosaic.version = 11 : i64} {
  func.func @_conv_bn_lrelu_kernel(%arg0: i32, %arg1: memref<16x128xbf16, #tpu.memory_space<vmem>>, %arg2: memref<128x512xbf16, #tpu.memory_space<vmem>>, %arg3: memref<16x1xf32, #tpu.memory_space<vmem>>, %arg4: memref<16x1xf32, #tpu.memory_space<vmem>>, %arg5: memref<16x512xbf16, #tpu.memory_space<vmem>>) attributes {dimension_semantics = [#tpu.dimension_semantics<arbitrary>], iteration_bounds = array<i64: 1>, scalar_prefetch = 0 : i64, scratch_operands = 0 : i64, tpu.core_type = #tpu.core_type<tc>, window_params = [{pipeline_mode = #tpu.pipeline_mode<synchronous>, transform_indices = @transform_0, window_bounds = array<i64: 16, 128>}, {pipeline_mode = #tpu.pipeline_mode<synchronous>, transform_indices = @transform_1, window_bounds = array<i64: 128, 512>}, {pipeline_mode = #tpu.pipeline_mode<synchronous>, transform_indices = @transform_2, window_bounds = array<i64: 16, 1>}, {pipeline_mode = #tpu.pipeline_mode<synchronous>, transform_indices = @transform_3, window_bounds = array<i64: 16, 1>}, {pipeline_mode = #tpu.pipeline_mode<synchronous>, transform_indices = @transform_4, window_bounds = array<i64: 16, 512>}]} {
    %c0 = arith.constant 0 : index
    %c0_0 = arith.constant 0 : index
    %0 = vector.load %arg1[%c0, %c0_0] : memref<16x128xbf16, #tpu.memory_space<vmem>>, vector<16x128xbf16>
    %c0_1 = arith.constant 0 : index
    %c0_2 = arith.constant 0 : index
    %1 = vector.load %arg2[%c0_1, %c0_2] : memref<128x512xbf16, #tpu.memory_space<vmem>>, vector<128x512xbf16>
    %cst = arith.constant dense<0.000000e+00> : vector<16x512xf32>
    %2 = tpu.matmul %0, %1, %cst {dimension_numbers = #tpu.dot_dimension_numbers<[1], [0], [0], [1], [0, 0, 1, 1], [], []>} : vector<16x128xbf16>, vector<128x512xbf16>, vector<16x512xf32> -> vector<16x512xf32>
    %c0_3 = arith.constant 0 : index
    %c0_4 = arith.constant 0 : index
    %3 = vector.load %arg3[%c0_3, %c0_4] : memref<16x1xf32, #tpu.memory_space<vmem>>, vector<16x1xf32>
    %c0_5 = arith.constant 0 : index
    %c0_6 = arith.constant 0 : index
    %4 = vector.load %arg4[%c0_5, %c0_6] : memref<16x1xf32, #tpu.memory_space<vmem>>, vector<16x1xf32>
    %cst_7 = arith.constant dense<0.000000e+00> : vector<16xf32>
    %5 = vector.multi_reduction <add>, %2, %cst_7 [1] : vector<16x512xf32> to vector<16xf32>
    %6 = vector.shape_cast %5 : vector<16xf32> to vector<16x1xf32>
    %7 = arith.mulf %2, %2 : vector<16x512xf32>
    %cst_8 = arith.constant dense<0.000000e+00> : vector<16xf32>
    %8 = vector.multi_reduction <add>, %7, %cst_8 [1] : vector<16x512xf32> to vector<16xf32>
    %9 = vector.shape_cast %8 : vector<16xf32> to vector<16x1xf32>
    %cst_9 = arith.constant 0.001953125 : f32
    %10 = vector.broadcast %cst_9 : f32 to vector<16x1xf32>
    %11 = arith.mulf %6, %10 : vector<16x1xf32>
    %cst_10 = arith.constant 0.001953125 : f32
    %12 = vector.broadcast %cst_10 : f32 to vector<16x1xf32>
    %13 = arith.mulf %9, %12 : vector<16x1xf32>
    %14 = arith.mulf %11, %11 : vector<16x1xf32>
    %15 = arith.subf %13, %14 : vector<16x1xf32>
    %cst_11 = arith.constant 0.000000e+00 : f32
    %16 = vector.broadcast %cst_11 : f32 to vector<16x1xf32>
    %17 = arith.maximumf %15, %16 : vector<16x1xf32>
    %18 = vector.broadcast %11 : vector<16x1xf32> to vector<16x512xf32>
    %19 = arith.subf %2, %18 : vector<16x512xf32>
    %cst_12 = arith.constant 9.99999974E-6 : f32
    %20 = vector.broadcast %cst_12 : f32 to vector<16x1xf32>
    %21 = arith.addf %17, %20 : vector<16x1xf32>
    %22 = math.rsqrt %21 : vector<16x1xf32>
    %23 = arith.mulf %22, %3 : vector<16x1xf32>
    %24 = vector.broadcast %23 : vector<16x1xf32> to vector<16x512xf32>
    %25 = arith.mulf %19, %24 : vector<16x512xf32>
    %26 = vector.broadcast %4 : vector<16x1xf32> to vector<16x512xf32>
    %27 = arith.addf %25, %26 : vector<16x512xf32>
    %cst_13 = arith.constant 0.000000e+00 : f32
    %28 = vector.broadcast %cst_13 : f32 to vector<16x512xf32>
    %29 = arith.cmpf oge, %27, %28 : vector<16x512xf32>
    %cst_14 = arith.constant 2.000000e-01 : f32
    %30 = vector.broadcast %cst_14 : f32 to vector<16x512xf32>
    %31 = arith.mulf %30, %27 : vector<16x512xf32>
    %32 = arith.select %29, %27, %31 : vector<16x512xi1>, vector<16x512xf32>
    %33 = arith.truncf %32 : vector<16x512xf32> to vector<16x512xbf16>
    %c0_15 = arith.constant 0 : index
    %c0_16 = arith.constant 0 : index
    %34 = vector.load %arg5[%c0_15, %c0_16] : memref<16x512xbf16, #tpu.memory_space<vmem>>, vector<16x512xbf16>
    tpu.vector_store %arg5[%c0_15, %c0_16], %33 {strides = array<i32>} : memref<16x512xbf16, #tpu.memory_space<vmem>>, vector<16x512xbf16>,
    return
  }
  func.func @transform_0(%arg0: i32) -> (i32, i32) {
    %c0_i32 = arith.constant 0 : i32
    %c0_i32_0 = arith.constant 0 : i32
    %c0_i32_1 = arith.constant 0 : i32
    return %c0_i32, %c0_i32_0 : i32, i32
  }
  func.func @transform_1(%arg0: i32) -> (i32, i32) {
    %c0_i32 = arith.constant 0 : i32
    %c0_i32_0 = arith.constant 0 : i32
    %c0_i32_1 = arith.constant 0 : i32
    return %c0_i32, %c0_i32_0 : i32, i32
  }
  func.func @transform_2(%arg0: i32) -> (i32, i32) {
    %c0_i32 = arith.constant 0 : i32
    %c0_i32_0 = arith.constant 0 : i32
    %c0_i32_1 = arith.constant 0 : i32
    return %c0_i32, %c0_i32_0 : i32, i32
  }
  func.func @transform_3(%arg0: i32) -> (i32, i32) {
    %c0_i32 = arith.constant 0 : i32
    %c0_i32_0 = arith.constant 0 : i32
    %c0_i32_1 = arith.constant 0 : i32
    return %c0_i32, %c0_i32_0 : i32, i32
  }
  func.func @transform_4(%arg0: i32) -> (i32, i32) {
    %c0_i32 = arith.constant 0 : i32
    %c0_i32_0 = arith.constant 0 : i32
    %c0_i32_1 = arith.constant 0 : i32
    return %c0_i32, %c0_i32_0 : i32, i32
  }
}

module attributes {stable_mosaic.version = 11 : i64} {
  func.func @_conv_bn_lrelu_kernel(%arg0: i32, %arg1: memref<32x256xbf16, #tpu.memory_space<vmem>>, %arg2: memref<256x128xbf16, #tpu.memory_space<vmem>>, %arg3: memref<32x1xf32, #tpu.memory_space<vmem>>, %arg4: memref<32x1xf32, #tpu.memory_space<vmem>>, %arg5: memref<32x128xbf16, #tpu.memory_space<vmem>>) attributes {dimension_semantics = [#tpu.dimension_semantics<arbitrary>], iteration_bounds = array<i64: 1>, scalar_prefetch = 0 : i64, scratch_operands = 0 : i64, tpu.core_type = #tpu.core_type<tc>, window_params = [{pipeline_mode = #tpu.pipeline_mode<synchronous>, transform_indices = @transform_0, window_bounds = array<i64: 32, 256>}, {pipeline_mode = #tpu.pipeline_mode<synchronous>, transform_indices = @transform_1, window_bounds = array<i64: 256, 128>}, {pipeline_mode = #tpu.pipeline_mode<synchronous>, transform_indices = @transform_2, window_bounds = array<i64: 32, 1>}, {pipeline_mode = #tpu.pipeline_mode<synchronous>, transform_indices = @transform_3, window_bounds = array<i64: 32, 1>}, {pipeline_mode = #tpu.pipeline_mode<synchronous>, transform_indices = @transform_4, window_bounds = array<i64: 32, 128>}]} {
    %c0 = arith.constant 0 : index
    %c0_0 = arith.constant 0 : index
    %0 = vector.load %arg1[%c0, %c0_0] : memref<32x256xbf16, #tpu.memory_space<vmem>>, vector<32x256xbf16>
    %c0_1 = arith.constant 0 : index
    %c0_2 = arith.constant 0 : index
    %1 = vector.load %arg2[%c0_1, %c0_2] : memref<256x128xbf16, #tpu.memory_space<vmem>>, vector<256x128xbf16>
    %cst = arith.constant dense<0.000000e+00> : vector<32x128xf32>
    %2 = tpu.matmul %0, %1, %cst {dimension_numbers = #tpu.dot_dimension_numbers<[1], [0], [0], [1], [0, 0, 1, 1], [], []>} : vector<32x256xbf16>, vector<256x128xbf16>, vector<32x128xf32> -> vector<32x128xf32>
    %c0_3 = arith.constant 0 : index
    %c0_4 = arith.constant 0 : index
    %3 = vector.load %arg3[%c0_3, %c0_4] : memref<32x1xf32, #tpu.memory_space<vmem>>, vector<32x1xf32>
    %c0_5 = arith.constant 0 : index
    %c0_6 = arith.constant 0 : index
    %4 = vector.load %arg4[%c0_5, %c0_6] : memref<32x1xf32, #tpu.memory_space<vmem>>, vector<32x1xf32>
    %cst_7 = arith.constant dense<0.000000e+00> : vector<32xf32>
    %5 = vector.multi_reduction <add>, %2, %cst_7 [1] : vector<32x128xf32> to vector<32xf32>
    %6 = vector.shape_cast %5 : vector<32xf32> to vector<32x1xf32>
    %7 = arith.mulf %2, %2 : vector<32x128xf32>
    %cst_8 = arith.constant dense<0.000000e+00> : vector<32xf32>
    %8 = vector.multi_reduction <add>, %7, %cst_8 [1] : vector<32x128xf32> to vector<32xf32>
    %9 = vector.shape_cast %8 : vector<32xf32> to vector<32x1xf32>
    %cst_9 = arith.constant 7.812500e-03 : f32
    %10 = vector.broadcast %cst_9 : f32 to vector<32x1xf32>
    %11 = arith.mulf %6, %10 : vector<32x1xf32>
    %cst_10 = arith.constant 7.812500e-03 : f32
    %12 = vector.broadcast %cst_10 : f32 to vector<32x1xf32>
    %13 = arith.mulf %9, %12 : vector<32x1xf32>
    %14 = arith.mulf %11, %11 : vector<32x1xf32>
    %15 = arith.subf %13, %14 : vector<32x1xf32>
    %cst_11 = arith.constant 0.000000e+00 : f32
    %16 = vector.broadcast %cst_11 : f32 to vector<32x1xf32>
    %17 = arith.maximumf %15, %16 : vector<32x1xf32>
    %18 = vector.broadcast %11 : vector<32x1xf32> to vector<32x128xf32>
    %19 = arith.subf %2, %18 : vector<32x128xf32>
    %cst_12 = arith.constant 9.99999974E-6 : f32
    %20 = vector.broadcast %cst_12 : f32 to vector<32x1xf32>
    %21 = arith.addf %17, %20 : vector<32x1xf32>
    %22 = math.rsqrt %21 : vector<32x1xf32>
    %23 = arith.mulf %22, %3 : vector<32x1xf32>
    %24 = vector.broadcast %23 : vector<32x1xf32> to vector<32x128xf32>
    %25 = arith.mulf %19, %24 : vector<32x128xf32>
    %26 = vector.broadcast %4 : vector<32x1xf32> to vector<32x128xf32>
    %27 = arith.addf %25, %26 : vector<32x128xf32>
    %cst_13 = arith.constant 0.000000e+00 : f32
    %28 = vector.broadcast %cst_13 : f32 to vector<32x128xf32>
    %29 = arith.cmpf oge, %27, %28 : vector<32x128xf32>
    %cst_14 = arith.constant 2.000000e-01 : f32
    %30 = vector.broadcast %cst_14 : f32 to vector<32x128xf32>
    %31 = arith.mulf %30, %27 : vector<32x128xf32>
    %32 = arith.select %29, %27, %31 : vector<32x128xi1>, vector<32x128xf32>
    %33 = arith.truncf %32 : vector<32x128xf32> to vector<32x128xbf16>
    %c0_15 = arith.constant 0 : index
    %c0_16 = arith.constant 0 : index
    %34 = vector.load %arg5[%c0_15, %c0_16] : memref<32x128xbf16, #tpu.memory_space<vmem>>, vector<32x128xbf16>
    tpu.vector_store %arg5[%c0_15, %c0_16], %33 {strides = array<i32>} : memref<32x128xbf16, #tpu.memory_space<vmem>>, vector<32x128xbf16>,
    return
  }
  func.func @transform_0(%arg0: i32) -> (i32, i32) {
    %c0_i32 = arith.constant 0 : i32
    %c0_i32_0 = arith.constant 0 : i32
    %c0_i32_1 = arith.constant 0 : i32
    return %c0_i32, %c0_i32_0 : i32, i32
  }
  func.func @transform_1(%arg0: i32) -> (i32, i32) {
    %c0_i32 = arith.constant 0 : i32
    %c0_i32_0 = arith.constant 0 : i32
    %c0_i32_1 = arith.constant 0 : i32
    return %c0_i32, %c0_i32_0 : i32, i32
  }
  func.func @transform_2(%arg0: i32) -> (i32, i32) {
    %c0_i32 = arith.constant 0 : i32
    %c0_i32_0 = arith.constant 0 : i32
    %c0_i32_1 = arith.constant 0 : i32
    return %c0_i32, %c0_i32_0 : i32, i32
  }
  func.func @transform_3(%arg0: i32) -> (i32, i32) {
    %c0_i32 = arith.constant 0 : i32
    %c0_i32_0 = arith.constant 0 : i32
    %c0_i32_1 = arith.constant 0 : i32
    return %c0_i32, %c0_i32_0 : i32, i32
  }
  func.func @transform_4(%arg0: i32) -> (i32, i32) {
    %c0_i32 = arith.constant 0 : i32
    %c0_i32_0 = arith.constant 0 : i32
    %c0_i32_1 = arith.constant 0 : i32
    return %c0_i32, %c0_i32_0 : i32, i32
  }
}

module attributes {stable_mosaic.version = 11 : i64} {
  func.func @_conv4_conv5_kernel(%arg0: i32, %arg1: memref<64x512xbf16, #tpu.memory_space<vmem>>, %arg2: memref<512x32xbf16, #tpu.memory_space<vmem>>, %arg3: memref<64x1xf32, #tpu.memory_space<vmem>>, %arg4: memref<64x1xf32, #tpu.memory_space<vmem>>, %arg5: memref<64x32xf32, #tpu.memory_space<vmem>>, %arg6: memref<2x32xf32, #tpu.memory_space<vmem>>, %arg7: memref<2x1xf32, #tpu.memory_space<vmem>>) attributes {dimension_semantics = [#tpu.dimension_semantics<arbitrary>], iteration_bounds = array<i64: 1>, scalar_prefetch = 0 : i64, scratch_operands = 0 : i64, tpu.core_type = #tpu.core_type<tc>, window_params = [{pipeline_mode = #tpu.pipeline_mode<synchronous>, transform_indices = @transform_0, window_bounds = array<i64: 64, 512>}, {pipeline_mode = #tpu.pipeline_mode<synchronous>, transform_indices = @transform_1, window_bounds = array<i64: 512, 32>}, {pipeline_mode = #tpu.pipeline_mode<synchronous>, transform_indices = @transform_2, window_bounds = array<i64: 64, 1>}, {pipeline_mode = #tpu.pipeline_mode<synchronous>, transform_indices = @transform_3, window_bounds = array<i64: 64, 1>}, {pipeline_mode = #tpu.pipeline_mode<synchronous>, transform_indices = @transform_4, window_bounds = array<i64: 64, 32>}, {pipeline_mode = #tpu.pipeline_mode<synchronous>, transform_indices = @transform_5, window_bounds = array<i64: 2, 32>}, {pipeline_mode = #tpu.pipeline_mode<synchronous>, transform_indices = @transform_6, window_bounds = array<i64: 2, 1>}]} {
    %c0 = arith.constant 0 : index
    %c0_0 = arith.constant 0 : index
    %0 = vector.load %arg1[%c0, %c0_0] : memref<64x512xbf16, #tpu.memory_space<vmem>>, vector<64x512xbf16>
    %c0_1 = arith.constant 0 : index
    %c0_2 = arith.constant 0 : index
    %1 = vector.load %arg2[%c0_1, %c0_2] : memref<512x32xbf16, #tpu.memory_space<vmem>>, vector<512x32xbf16>
    %cst = arith.constant dense<0.000000e+00> : vector<64x32xf32>
    %2 = tpu.matmul %0, %1, %cst {dimension_numbers = #tpu.dot_dimension_numbers<[1], [0], [0], [1], [0, 0, 1, 1], [], []>} : vector<64x512xbf16>, vector<512x32xbf16>, vector<64x32xf32> -> vector<64x32xf32>
    %c0_3 = arith.constant 0 : index
    %c0_4 = arith.constant 0 : index
    %3 = vector.load %arg3[%c0_3, %c0_4] : memref<64x1xf32, #tpu.memory_space<vmem>>, vector<64x1xf32>
    %c0_5 = arith.constant 0 : index
    %c0_6 = arith.constant 0 : index
    %4 = vector.load %arg4[%c0_5, %c0_6] : memref<64x1xf32, #tpu.memory_space<vmem>>, vector<64x1xf32>
    %cst_7 = arith.constant dense<0.000000e+00> : vector<64xf32>
    %5 = vector.multi_reduction <add>, %2, %cst_7 [1] : vector<64x32xf32> to vector<64xf32>
    %6 = vector.shape_cast %5 : vector<64xf32> to vector<64x1xf32>
    %7 = arith.mulf %2, %2 : vector<64x32xf32>
    %cst_8 = arith.constant dense<0.000000e+00> : vector<64xf32>
    %8 = vector.multi_reduction <add>, %7, %cst_8 [1] : vector<64x32xf32> to vector<64xf32>
    %9 = vector.shape_cast %8 : vector<64xf32> to vector<64x1xf32>
    %cst_9 = arith.constant 3.125000e-02 : f32
    %10 = vector.broadcast %cst_9 : f32 to vector<64x1xf32>
    %11 = arith.mulf %6, %10 : vector<64x1xf32>
    %cst_10 = arith.constant 3.125000e-02 : f32
    %12 = vector.broadcast %cst_10 : f32 to vector<64x1xf32>
    %13 = arith.mulf %9, %12 : vector<64x1xf32>
    %14 = arith.mulf %11, %11 : vector<64x1xf32>
    %15 = arith.subf %13, %14 : vector<64x1xf32>
    %cst_11 = arith.constant 0.000000e+00 : f32
    %16 = vector.broadcast %cst_11 : f32 to vector<64x1xf32>
    %17 = arith.maximumf %15, %16 : vector<64x1xf32>
    %18 = vector.broadcast %11 : vector<64x1xf32> to vector<64x32xf32>
    %19 = arith.subf %2, %18 : vector<64x32xf32>
    %cst_12 = arith.constant 9.99999974E-6 : f32
    %20 = vector.broadcast %cst_12 : f32 to vector<64x1xf32>
    %21 = arith.addf %17, %20 : vector<64x1xf32>
    %22 = math.rsqrt %21 : vector<64x1xf32>
    %23 = arith.mulf %22, %3 : vector<64x1xf32>
    %24 = vector.broadcast %23 : vector<64x1xf32> to vector<64x32xf32>
    %25 = arith.mulf %19, %24 : vector<64x32xf32>
    %26 = vector.broadcast %4 : vector<64x1xf32> to vector<64x32xf32>
    %27 = arith.addf %25, %26 : vector<64x32xf32>
    %cst_13 = arith.constant 0.000000e+00 : f32
    %28 = vector.broadcast %cst_13 : f32 to vector<64x32xf32>
    %29 = arith.cmpf oge, %27, %28 : vector<64x32xf32>
    %cst_14 = arith.constant 2.000000e-01 : f32
    %30 = vector.broadcast %cst_14 : f32 to vector<64x32xf32>
    %31 = arith.mulf %30, %27 : vector<64x32xf32>
    %32 = arith.select %29, %27, %31 : vector<64x32xi1>, vector<64x32xf32>
    %c0_15 = arith.constant 0 : index
    %c0_16 = arith.constant 0 : index
    %33 = vector.load %arg5[%c0_15, %c0_16] : memref<64x32xf32, #tpu.memory_space<vmem>>, vector<64x32xf32>
    %34 = arith.mulf %33, %32 : vector<64x32xf32>
    %cst_17 = arith.constant dense<0.000000e+00> : vector<32xf32>
    %35 = vector.multi_reduction <add>, %34, %cst_17 [0] : vector<64x32xf32> to vector<32xf32>
    %36 = vector.shape_cast %35 : vector<32xf32> to vector<1x32xf32>
    %c0_18 = arith.constant 0 : index
    %c0_19 = arith.constant 0 : index
    %37 = vector.load %arg6[%c0_18, %c0_19] : memref<2x32xf32, #tpu.memory_space<vmem>>, vector<2x32xf32>
    %38 = vector.broadcast %36 : vector<1x32xf32> to vector<2x32xf32>
    %39 = arith.mulf %37, %38 : vector<2x32xf32>
    %cst_20 = arith.constant dense<0.000000e+00> : vector<2xf32>
    %40 = vector.multi_reduction <add>, %39, %cst_20 [1] : vector<2x32xf32> to vector<2xf32>
    %41 = vector.shape_cast %40 : vector<2xf32> to vector<2x1xf32>
    %42 = math.absf %41 : vector<2x1xf32>
    %cst_21 = arith.constant 0.000000e+00 : f32
    %43 = vector.broadcast %cst_21 : f32 to vector<2x1xf32>
    %44 = arith.subf %43, %42 : vector<2x1xf32>
    %45 = math.exp %44 : vector<2x1xf32>
    %cst_22 = arith.constant 0.000000e+00 : f32
    %46 = vector.broadcast %cst_22 : f32 to vector<2x1xf32>
    %47 = arith.cmpf oge, %41, %46 : vector<2x1xf32>
    %cst_23 = arith.constant 1.000000e+00 : f32
    %48 = vector.broadcast %cst_23 : f32 to vector<2x1xf32>
    %49 = arith.addf %48, %45 : vector<2x1xf32>
    %cst_24 = arith.constant 1.000000e+00 : f32
    %50 = vector.broadcast %cst_24 : f32 to vector<2x1xf32>
    %51 = arith.divf %50, %49 : vector<2x1xf32>
    %cst_25 = arith.constant 1.000000e+00 : f32
    %52 = vector.broadcast %cst_25 : f32 to vector<2x1xf32>
    %53 = arith.addf %52, %45 : vector<2x1xf32>
    %54 = arith.divf %45, %53 : vector<2x1xf32>
    %55 = arith.select %47, %51, %54 : vector<2x1xi1>, vector<2x1xf32>
    %c0_26 = arith.constant 0 : index
    %c0_27 = arith.constant 0 : index
    %56 = vector.load %arg7[%c0_26, %c0_27] : memref<2x1xf32, #tpu.memory_space<vmem>>, vector<2x1xf32>
    tpu.vector_store %arg7[%c0_26, %c0_27], %55 {strides = array<i32>} : memref<2x1xf32, #tpu.memory_space<vmem>>, vector<2x1xf32>,
    return
  }
  func.func @transform_0(%arg0: i32) -> (i32, i32) {
    %c0_i32 = arith.constant 0 : i32
    %c0_i32_0 = arith.constant 0 : i32
    %c0_i32_1 = arith.constant 0 : i32
    return %c0_i32, %c0_i32_0 : i32, i32
  }
  func.func @transform_1(%arg0: i32) -> (i32, i32) {
    %c0_i32 = arith.constant 0 : i32
    %c0_i32_0 = arith.constant 0 : i32
    %c0_i32_1 = arith.constant 0 : i32
    return %c0_i32, %c0_i32_0 : i32, i32
  }
  func.func @transform_2(%arg0: i32) -> (i32, i32) {
    %c0_i32 = arith.constant 0 : i32
    %c0_i32_0 = arith.constant 0 : i32
    %c0_i32_1 = arith.constant 0 : i32
    return %c0_i32, %c0_i32_0 : i32, i32
  }
  func.func @transform_3(%arg0: i32) -> (i32, i32) {
    %c0_i32 = arith.constant 0 : i32
    %c0_i32_0 = arith.constant 0 : i32
    %c0_i32_1 = arith.constant 0 : i32
    return %c0_i32, %c0_i32_0 : i32, i32
  }
  func.func @transform_4(%arg0: i32) -> (i32, i32) {
    %c0_i32 = arith.constant 0 : i32
    %c0_i32_0 = arith.constant 0 : i32
    %c0_i32_1 = arith.constant 0 : i32
    return %c0_i32, %c0_i32_0 : i32, i32
  }
  func.func @transform_5(%arg0: i32) -> (i32, i32) {
    %c0_i32 = arith.constant 0 : i32
    %c0_i32_0 = arith.constant 0 : i32
    %c0_i32_1 = arith.constant 0 : i32
    return %c0_i32, %c0_i32_0 : i32, i32
  }
  func.func @transform_6(%arg0: i32) -> (i32, i32) {
    %c0_i32 = arith.constant 0 : i32
    %c0_i32_0 = arith.constant 0 : i32
    %c0_i32_1 = arith.constant 0 : i32
    return %c0_i32, %c0_i32_0 : i32, i32
  }
}

</mosaic_0001>

<bundles_post_ra>
// kernel: discriminator_forward.4
= control target key start
LH: loop header
LB: loop body
LE: loop exit
PB: predicated region body
PF: predicated region fallthrough
CT: control target
= control target key end

     0   :  { %s555_s9 = smov 0   ;;  %s557_s10 = smov 0   ;;  %s610_s0 = inlined_call_operand.vmem [shape: bf16[8,48], index: 0, kind: input, shape index: {}]   ;;  %s611_s1 = inlined_call_operand.vmem [shape: bf16[48,2048], index: 1, kind: input, shape index: {}]   ;;  %s612_s2 = inlined_call_operand.vmem [shape: bf16[8,2048], index: 2, kind: output, shape index: {}]  }
   0x1   :  { %s559_s11 = smov 0  }
   0x2 LB: > { %s440_s12 = sadd.s32 4294967295, %s537_s11   ;;  %s572_s13 = sadd.s32 1, %s537_s11   ;;  %s537_s11 = sphi %s559_s11, %s615_s11   ;;  %s533_s10 = sphi %s557_s10, %s614_s10   ;;  %s529_s9 = sphi %s555_s9, %s613_s9  }
   0x3   : > { %s37_s14 = ssub.s32 %s537_s11, %s572_s13  ;;  %s40_s15 = sadd.s32 1, %s533_s10 }
   0x4   : > { %p38_p0 = scmp.eq.s32.totalorder %s37_s14, 0  ;;  %p47_p1 = scmp.ne.s32.totalorder %s533_s10, %s529_s9 }
   0x5   : > { %p48_p2 = scmp.eq.s32.totalorder %s537_s11, 0  ;;  %p443_p4 = scmp.ge.s32.totalorder %s537_s11, 4 }
   0x6   : > { %s581_s16 = scalar_select %p38_p0, %s533_s10, %s40_s15  }
   0x7   : > { %p49_p3 = por %p48_p2, %p47_p1  ;;  %102 = sbr.rel (%p443_p4) target bundleno = 24 (0x18), region = 20 }
   0xe   : > { %105 = sbr.rel (!%p49_p3) target bundleno = 24 (0x18), region = 24  ;;  %s107_s17 = sand.u32 (%p49_p3), 1, %s533_s10  }
   0xf   : > { %s467_s18 = sshll.u32 (%p49_p3), %s537_s11, 4  ;;  %s470_s19 = smul.u32 (%p49_p3), 96, %s107_s17 }
  0x10   : > { %s112_s22 = scalar_lea.vmem (%p49_p3), %s611_s1, %s467_s18 }
  0x11   : > { %v125_v0 = vld [vmem:[%s112_s22] sm:$0xff] (%p49_p3)  ;;  %v127_v1 = vld [vmem:[%s112_s22 + $0x8] sm:$0xff] (%p49_p3)  ;;  %s109_s23 = scalar_lea.vmem (%p49_p3), [#allocation2], %s470_s19 }
  0x12   : > { %v129_v2 = vld [vmem:[%s112_s22 + $0x40] sm:$0xff] (%p49_p3)  ;;  %v131_v3 = vld [vmem:[%s112_s22 + $0x48] sm:$0xff] (%p49_p3)  ;;  %126 = vst [vmem:[%s109_s23] sm:$0xff] (%p49_p3), %v125_v0  ;;  %128 = vst [vmem:[%s109_s23 + $0x8] sm:$0xff] (%p49_p3), %v127_v1 }
  0x13   : > { %v133_v4 = vld [vmem:[%s112_s22 + $0x80] sm:$0xff] (%p49_p3)  ;;  %v135_v5 = vld [vmem:[%s112_s22 + $0x88] sm:$0xff] (%p49_p3)  ;;  %130 = vst [vmem:[%s109_s23 + $0x10] sm:$0xff] (%p49_p3), %v129_v2  ;;  %132 = vst [vmem:[%s109_s23 + $0x18] sm:$0xff] (%p49_p3), %v131_v3 }
  0x14   : > { %134 = vst [vmem:[%s109_s23 + $0x20] sm:$0xff] (%p49_p3), %v133_v4  ;;  %136 = vst [vmem:[%s109_s23 + $0x28] sm:$0xff] (%p49_p3), %v135_v5  ;;  %v137_v6 = vld [vmem:[%s112_s22 + $0xc0] sm:$0xff] (%p49_p3)  ;;  %v139_v7 = vld [vmem:[%s112_s22 + $0xc8] sm:$0xff] (%p49_p3) }
  0x15   : > { %v141_v8 = vld [vmem:[%s112_s22 + $0x100] sm:$0xff]  ;;  %138 = vst [vmem:[%s109_s23 + $0x30] sm:$0xff] %v137_v6  ;;  %140 = vst [vmem:[%s109_s23 + $0x38] sm:$0xff] %v139_v7  ;;  %v143_v9 = vld [vmem:[%s112_s22 + $0x108] sm:$0xff] }
  0x16   : > { %142 = vst [vmem:[%s109_s23 + $0x40] sm:$0xff] %v141_v8  ;;  %v145_v10 = vld [vmem:[%s112_s22 + $0x140] sm:$0xff]  ;;  %v147_v11 = vld [vmem:[%s112_s22 + $0x148] sm:$0xff]  ;;  %144 = vst [vmem:[%s109_s23 + $0x48] sm:$0xff] %v143_v9 }
  0x17   : > { %146 = vst [vmem:[%s109_s23 + $0x50] sm:$0xff] %v145_v10  ;;  %148 = vst [vmem:[%s109_s23 + $0x58] sm:$0xff] %v147_v11 }
  0x18 PF: > { %p446_p5 = scmp.ge.s32.totalorder %s537_s11, 1  ;;  %p153_p6 = scmp.lt.s32.totalorder %s537_s11, 5 }
  0x1a   : > { %p154_p7 = pnand %p446_p5, %p153_p6 }
  0x1b   : > { %s160_s24 = sand.u32 (!%p154_p7), 1, %s529_s9   ;;  %v539_v12 = vmov (!%p154_p7), 0   ;;  %v189_v25 = vld [vmem:[%s610_s0] sm:$0xf] (!%p154_p7)  ;;  %vm262_vm0 = vcmask (!%p154_p7), 392192   ;;  %s447_s29 = sshll.u32 (!%p154_p7), %s440_s12, 2 }
  0x1c   : > { %157 = sbr.rel (%p154_p7) target bundleno = 266 (0x10a), region = 47  ;;  %298 = vmatprep.mubr.bf16.mxu0 (!%p154_p7), %v539_v12  ;;  %339 = vmatprep.mubr.bf16.mxu1 (!%p154_p7), %v539_v12  ;;  %p183_p8 = scmp.lt.s32.totalorder (!%p154_p7), %s447_s29, 15 }
  0x1d   : > { %s471_s25 = smul.u32 (!%p154_p7), 96, %s160_s24 }
  0x1f   : > { %s162_s26 = scalar_lea.vmem (!%p154_p7), [#allocation2], %s471_s25 }
  0x20   : > { %v497_v13 = vld [vmem:[%s162_s26 + $0x4] ss:$16 sps:$4 sm:$0xff] (!%p154_p7)   ;;  %v499_v14 = vld [vmem:[%s162_s26 + $0xc] ss:$16 sps:$4 sm:$0xff] (!%p154_p7)   ;;  %v501_v15 = vld [vmem:[%s162_s26] ss:$16 sps:$4 sm:$0xff] (!%p154_p7)  }
  0x21   : > { %266 = vmatprep.subr.bf16.mxu0 (!%p154_p7), %v497_v13  ;;  %v502_v16 = vld [vmem:[%s162_s26 + $0x8] ss:$16 sps:$4 sm:$0xff] (!%p154_p7)   ;;  %307 = vmatprep.subr.bf16.mxu1 (!%p154_p7), %v499_v14  ;;  %v503_v17 = vld [vmem:[%s162_s26 + $0x24] ss:$16 sps:$4 sm:$0xff] (!%p154_p7)   ;;  %v505_v18 = vld [vmem:[%s162_s26 + $0x2c] ss:$16 sps:$4 sm:$0xff] (!%p154_p7)  }
  0x22   : > { %267 = vmatpush1.bf16.msra.mxu0 (!%p154_p7), %v501_v15  ;;  %308 = vmatpush1.bf16.msra.mxu1 (!%p154_p7), %v502_v16  ;;  %v507_v19 = vld [vmem:[%s162_s26 + $0x20] ss:$16 sps:$4 sm:$0xff] (!%p154_p7)   ;;  %v508_v20 = vld [vmem:[%s162_s26 + $0x28] ss:$16 sps:$4 sm:$0xff] (!%p154_p7)   ;;  %v509_v21 = vld [vmem:[%s162_s26 + $0x44] ss:$16 sps:$4 sm:$0xff] (!%p154_p7)  }
  0x23   : > { %268 = vmatprep.subr.bf16.mxu0 %v503_v17  ;;  %309 = vmatprep.subr.bf16.mxu1 %v505_v18  ;;  %v511_v22 = vld [vmem:[%s162_s26 + $0x4c] ss:$16 sps:$4 sm:$0xff]   ;;  %v513_v23 = vld [vmem:[%s162_s26 + $0x40] ss:$16 sps:$4 sm:$0xff]   ;;  %v514_v24 = vld [vmem:[%s162_s26 + $0x48] ss:$16 sps:$4 sm:$0xff]  }
  0x24   : > { %s617_s29 = smov (!%p183_p8, %s447_s29), 15 }
  0x25   : > { %s448_s30 = sshll.u32 %s617_s29, 2 }
  0x26   : > { %269 = vmatpush1.bf16.msra.mxu0 %v507_v19  ;;  %310 = vmatpush1.bf16.msra.mxu1 %v508_v20  ;;  %s186_s5 = scalar_lea.vmem %s612_s2, %s448_s30 }
  0x27   : > { %270 = vmatprep.subr.bf16.mxu0 %v509_v21  ;;  %311 = vmatprep.subr.bf16.mxu1 %v511_v22 }
  0x2a   : > { %271 = vmatpush1.bf16.msra.mxu0 %v513_v23  ;;  %312 = vmatpush1.bf16.msra.mxu1 %v514_v24 }
  0x2d   : > { %461 = vmatmul.mubr.msk.bf16.vlgmr.msra.gmra.mrb[0].mxu0 %vm262_vm0, %v189_v25  ;;  %462 = vmatmul.mubr.msk.bf16.vlgmr.msra.gmra.mrb[0].mxu1 %vm262_vm0, %v189_v25 }
 0x100   : > { %v300_v26 = vpop.f32.mrb[0].mxu0  ;;  %v341_v27 = vpop.f32.mrb[0].mxu1 }
 0x101   : > { %vm348_vm1 = vcmp.ge.f32.partialorder %v300_v26, 0.0  ;;  %v352_v28 = vmul.f32 0.2, %v300_v26  ;;  %vm350_vm2 = vcmp.ge.f32.partialorder %v341_v27, 0.0  ;;  %v354_v29 = vmul.f32 0.2, %v341_v27 }
 0x102   : > { %v302_v30 = vpop.f32.mrb[1].mxu0  ;;  %v343_v31 = vpop.f32.mrb[1].mxu1 }
 0x103   : > { %v356_v32 = vsel %vm348_vm1, %v300_v26, %v352_v28  ;;  %vm349_vm3 = vcmp.ge.f32.partialorder %v302_v30, 0.0  ;;  %v353_v33 = vmul.f32 0.2, %v302_v30  ;;  %v304_v34 = vpop.f32.mrb[2].mxu0  ;;  %v345_v35 = vpop.f32.mrb[2].mxu1  ;;  %v358_v36 = vsel %vm350_vm2, %v341_v27, %v354_v29 }
 0x104   : > { %vm351_vm4 = vcmp.ge.f32.partialorder %v343_v31, 0.0  ;;  %v355_v37 = vmul.f32 0.2, %v343_v31  ;;  %v305_v38 = vpop.f32.mrb[3].mxu0  ;;  %v346_v39 = vpop.f32.mrb[3].mxu1 }
 0x105   : > { %v357_v40 = vsel %vm349_vm3, %v302_v30, %v353_v33 }
 0x106   : > { %v468_v41 = vpack.c.bf16 %v357_v40, %v356_v32  ;;  %v359_v42 = vsel %vm351_vm4, %v343_v31, %v355_v37 }
 0x107   : > { %v469_v43 = vpack.c.bf16 %v359_v42, %v358_v36 }
 0x108   : > { %376 = vst [vmem:[%s186_s5] sm:$0xff] %v468_v41 }
 0x109   : > { %377 = vst [vmem:[%s186_s5 + $0x8] sm:$0xff] %v469_v43 }
 0x10a PF: > { %p9_p9 = scmp.ge.s32.totalorder %s572_s13, 6   ;;  %s613_s9 = smov %s533_s10 }
 0x10b   : > { %s614_s10 = smov %s581_s16  ;;  %s615_s11 = smov %s572_s13 }
 0x10c   :  { %11 = sbr.rel (!%p9_p9) target bundleno = 2 (0x2), region = 86 }

// kernel: discriminator_forward.5
= control target key start
LH: loop header
LB: loop body
LE: loop exit
PB: predicated region body
PF: predicated region fallthrough
CT: control target
= control target key end

     0   :  { %v549_v1 = vmov 0   ;;  %s746_s1 = inlined_call_operand.vmem [shape: bf16[128,512], index: 1, kind: input, shape index: {}]   ;;  %s747_s0 = inlined_call_operand.vmem [shape: bf16[16,128], index: 0, kind: input, shape index: {}]   ;;  %s748_s3 = inlined_call_operand.vmem [shape: f32[16,1], index: 3, kind: input, shape index: {}]   ;;  %s749_s2 = inlined_call_operand.vmem [shape: f32[16,1], index: 2, kind: input, shape index: {}]   ;;  %s750_s4 = inlined_call_operand.vmem [shape: bf16[16,512], index: 4, kind: output, shape index: {}]  }
   0x1   :  { %v496_v0 = vld [vmem:[%s746_s1 + $0x4] ss:$16 sps:$4 sm:$0xff]   ;;  %250 = vmatprep.mubr.bf16.mxu0 %v549_v1  ;;  %293 = vmatprep.mubr.bf16.mxu1 %v549_v1  ;;  %v498_v2 = vld [vmem:[%s746_s1 + $0xc] ss:$16 sps:$4 sm:$0xff]   ;;  %v500_v3 = vld [vmem:[%s746_s1] ss:$16 sps:$4 sm:$0xff]  }
   0x2   :  { %495 = vset.pattern.permute.xlu1 %v549_v1  ;;  %494 = vset.pattern.permute.xlu0 %v549_v1  ;;  %v501_v4 = vld [vmem:[%s746_s1 + $0x8] ss:$16 sps:$4 sm:$0xff]   ;;  %v502_v5 = vld [vmem:[%s746_s1 + $0x24] ss:$16 sps:$4 sm:$0xff]   ;;  %v504_v6 = vld [vmem:[%s746_s1 + $0x2c] ss:$16 sps:$4 sm:$0xff]  }
   0x3   :  { %218 = vmatprep.subr.bf16.mxu0 %v496_v0  ;;  %261 = vmatprep.subr.bf16.mxu1 %v498_v2  ;;  %v506_v7 = vld [vmem:[%s746_s1 + $0x20] ss:$16 sps:$4 sm:$0xff]   ;;  %v507_v8 = vld [vmem:[%s746_s1 + $0x28] ss:$16 sps:$4 sm:$0xff]   ;;  %v508_v9 = vld [vmem:[%s746_s1 + $0x44] ss:$16 sps:$4 sm:$0xff]  }
   0x4   :  { %219 = vmatpush1.bf16.msra.mxu0 %v500_v3  ;;  %262 = vmatpush1.bf16.msra.mxu1 %v501_v4  ;;  %v510_v10 = vld [vmem:[%s746_s1 + $0x4c] ss:$16 sps:$4 sm:$0xff]   ;;  %v512_v11 = vld [vmem:[%s746_s1 + $0x40] ss:$16 sps:$4 sm:$0xff]   ;;  %v513_v12 = vld [vmem:[%s746_s1 + $0x48] ss:$16 sps:$4 sm:$0xff]  }
   0x5   :  { %220 = vmatprep.subr.bf16.mxu0 %v502_v5  ;;  %263 = vmatprep.subr.bf16.mxu1 %v504_v6  ;;  %v514_v13 = vld [vmem:[%s746_s1 + $0x64] ss:$16 sps:$4 sm:$0xff]   ;;  %v516_v14 = vld [vmem:[%s746_s1 + $0x6c] ss:$16 sps:$4 sm:$0xff]   ;;  %v518_v15 = vld [vmem:[%s746_s1 + $0x60] ss:$16 sps:$4 sm:$0xff]  }
   0x6   :  { %v519_v16 = vld [vmem:[%s746_s1 + $0x68] ss:$16 sps:$4 sm:$0xff]   ;;  %v520_v17 = vld [vmem:[%s746_s1 + $0x84] ss:$16 sps:$4 sm:$0xff]   ;;  %v522_v18 = vld [vmem:[%s746_s1 + $0x8c] ss:$16 sps:$4 sm:$0xff]  }
   0x7   :  { %v524_v19 = vld [vmem:[%s746_s1 + $0x80] ss:$16 sps:$4 sm:$0xff]   ;;  %v525_v20 = vld [vmem:[%s746_s1 + $0x88] ss:$16 sps:$4 sm:$0xff]   ;;  %v526_v21 = vld [vmem:[%s746_s1 + $0xa4] ss:$16 sps:$4 sm:$0xff]  }
   0x8   :  { %221 = vmatpush1.bf16.msra.mxu0 %v506_v7  ;;  %264 = vmatpush1.bf16.msra.mxu1 %v507_v8  ;;  %v528_v22 = vld [vmem:[%s746_s1 + $0xac] ss:$16 sps:$4 sm:$0xff]   ;;  %v530_v23 = vld [vmem:[%s746_s1 + $0xa0] ss:$16 sps:$4 sm:$0xff]   ;;  %v531_v24 = vld [vmem:[%s746_s1 + $0xa8] ss:$16 sps:$4 sm:$0xff]  }
   0x9   :  { %222 = vmatprep.subr.bf16.mxu0 %v508_v9  ;;  %265 = vmatprep.subr.bf16.mxu1 %v510_v10  ;;  %v532_v25 = vld [vmem:[%s746_s1 + $0xc4] ss:$16 sps:$4 sm:$0xff]   ;;  %v534_v26 = vld [vmem:[%s746_s1 + $0xcc] ss:$16 sps:$4 sm:$0xff]   ;;  %v536_v27 = vld [vmem:[%s746_s1 + $0xc0] ss:$16 sps:$4 sm:$0xff]  }
   0xa   :  { %v537_v28 = vld [vmem:[%s746_s1 + $0xc8] ss:$16 sps:$4 sm:$0xff]   ;;  %v538_v29 = vld [vmem:[%s746_s1 + $0xe4] ss:$16 sps:$4 sm:$0xff]   ;;  %v540_v30 = vld [vmem:[%s746_s1 + $0xec] ss:$16 sps:$4 sm:$0xff]  }
   0xb   :  { %v542_v31 = vld [vmem:[%s746_s1 + $0xe0] ss:$16 sps:$4 sm:$0xff]   ;;  %v543_v32 = vld [vmem:[%s746_s1 + $0xe8] ss:$16 sps:$4 sm:$0xff]  }
   0xc   :  { %223 = vmatpush1.bf16.msra.mxu0 %v512_v11  ;;  %266 = vmatpush1.bf16.msra.mxu1 %v513_v12  ;;  %v544_v33 = vld [vmem:[%s747_s0] sm:$0xff]  }
   0xd   :  { %224 = vmatprep.subr.bf16.mxu0 %v514_v13  ;;  %267 = vmatprep.subr.bf16.mxu1 %v516_v14  ;;  %v306_v62 = vld [vmem:[%s748_s3] sm:$0xff] }
  0x10   :  { %225 = vmatpush1.bf16.msra.mxu0 %v518_v15  ;;  %268 = vmatpush1.bf16.msra.mxu1 %v519_v16 }
  0x11   :  { %226 = vmatprep.subr.bf16.mxu0 %v520_v17  ;;  %269 = vmatprep.subr.bf16.mxu1 %v522_v18 }
  0x14   :  { %227 = vmatpush1.bf16.msra.mxu0 %v524_v19  ;;  %270 = vmatpush1.bf16.msra.mxu1 %v525_v20 }
  0x15   :  { %228 = vmatprep.subr.bf16.mxu0 %v526_v21  ;;  %271 = vmatprep.subr.bf16.mxu1 %v528_v22 }
  0x18   :  { %229 = vmatpush1.bf16.msra.mxu0 %v530_v23  ;;  %272 = vmatpush1.bf16.msra.mxu1 %v531_v24  ;;  %v304_v23 = vld [vmem:[%s749_s2] sm:$0xff] }
  0x19   :  { %230 = vmatprep.subr.bf16.mxu0 %v532_v25  ;;  %273 = vmatprep.subr.bf16.mxu1 %v534_v26  ;;  %v305_v26 = vld [vmem:[%s749_s2 + $0x8] sm:$0xff] }
  0x1c   :  { %231 = vmatpush1.bf16.msra.mxu0 %v536_v27  ;;  %274 = vmatpush1.bf16.msra.mxu1 %v537_v28 }
  0x1d   :  { %232 = vmatprep.subr.bf16.mxu0 %v538_v29  ;;  %275 = vmatprep.subr.bf16.mxu1 %v540_v30  ;;  %v307_v29 = vld [vmem:[%s748_s3 + $0x8] sm:$0xff] }
  0x20   :  { %233 = vmatpush1.bf16.msra.mxu0 %v542_v31  ;;  %276 = vmatpush1.bf16.msra.mxu1 %v543_v32 }
  0x23   :  { %251 = vmatmul.mubr.bf16.vlgmr.msra.gmra.mrb[0].mxu0 %v544_v33  ;;  %294 = vmatmul.mubr.bf16.vlgmr.msra.gmra.mrb[0].mxu1 %v544_v33 }
  0xf6   :  { %v674_v34 = vpop.f32.mrb[0].mxu0  ;;  %v676_v35 = vpop.f32.mrb[0].mxu1 }
  0xf7   :  { %v318_v36 = vmul.f32 %v674_v34, %v674_v34  ;;  %v680_v37 = vpop.f32.mrb[1].mxu0  ;;  %v682_v38 = vpop.f32.mrb[1].mxu1  ;;  %v320_v43 = vmul.f32 %v676_v35, %v676_v35 }
  0xf8   :  { %v308_v39 = vadd.f32 %v680_v37, %v674_v34  ;;  %v319_v40 = vmul.f32 %v680_v37, %v680_v37  ;;  %v688_v41 = vpop.f32.mrb[2].mxu0  ;;  %v690_v42 = vpop.f32.mrb[2].mxu1  ;;  %v321_v55 = vmul.f32 %v682_v38, %v682_v38 }
  0xf9   :  { %v322_v44 = vmul.f32 %v688_v41, %v688_v41  ;;  %v696_v45 = vpop.f32.mrb[3].mxu0  ;;  %v698_v46 = vpop.f32.mrb[3].mxu1  ;;  %v324_v51 = vmul.f32 %v690_v42, %v690_v42 }
  0xfa   :  { %v313_v47 = vadd.f32 %v696_v45, %v688_v41  ;;  %v323_v48 = vmul.f32 %v696_v45, %v696_v45  ;;  %v309_v49 = vadd.f32 %v308_v39, %v676_v35  ;;  %v326_v50 = vadd.f32 %v319_v40, %v318_v36 }
  0xfb   :  { %v325_v57 = vmul.f32 %v698_v46, %v698_v46 }
  0xfc   :  { %v331_v52 = vadd.f32 %v323_v48, %v322_v44  ;;  %v310_v53 = vadd.f32 %v309_v49, %v682_v38  ;;  %v314_v54 = vadd.f32 %v313_v47, %v690_v42  ;;  %v327_v56 = vadd.f32 %v326_v50, %v320_v43 }
  0xfe   :  { %311 = vadd.xlane.f32.xlu0 %v310_v53  ;;  %v315_v58 = vadd.f32 %v314_v54, %v698_v46  ;;  %v332_v59 = vadd.f32 %v331_v52, %v324_v51  ;;  %v328_v60 = vadd.f32 %v327_v56, %v321_v55 }
 0x100   :  { %v333_v61 = vadd.f32 %v332_v59, %v325_v57  ;;  %329 = vadd.xlane.f32.xlu1 %v328_v60 }
 0x102   :  { %316 = vadd.xlane.f32.xlu0 %v315_v58 }
 0x104   :  { %334 = vadd.xlane.f32.xlu1 %v333_v61 }
 0x115   :  { %380 = vperm.xlu1 %495, %v306_v62  }
 0x18b   :  { %v312_v63 = vpop.xlane.xlu0 %311 }
 0x18c   :  { %v336_v0 = vmul.f32 0.001953125, %v312_v63 }
 0x18d   :  { %v330_v1 = vpop.xlane.xlu1 %329 }
 0x18e   :  { %v340_v2 = vmul.f32 %v336_v0, %v336_v0  ;;  %v346_v3 = vsub.f32 %v674_v34, %v336_v0  ;;  %v347_v4 = vsub.f32 %v680_v37, %v336_v0  ;;  %v348_v5 = vsub.f32 %v676_v35, %v336_v0 }
 0x18f   :  { %v338_v6 = vmul.f32 0.001953125, %v330_v1  ;;  %v317_v7 = vpop.xlane.xlu0 %316  ;;  %v349_v8 = vsub.f32 %v682_v38, %v336_v0 }
 0x190   :  { %v337_v9 = vmul.f32 0.001953125, %v317_v7 }
 0x191   :  { %v342_v10 = vsub.f32 %v338_v6, %v340_v2  ;;  %v335_v11 = vpop.xlane.xlu1 %334 }
 0x192   :  { %v341_v12 = vmul.f32 %v337_v9, %v337_v9  ;;  %v350_v13 = vsub.f32 %v688_v41, %v337_v9  ;;  %v351_v14 = vsub.f32 %v696_v45, %v337_v9  ;;  %v352_v15 = vsub.f32 %v690_v42, %v337_v9 }
 0x193   :  { %v344_v16 = vmax.f32 %v342_v10, 0.0  ;;  %v339_v17 = vmul.f32 0.001953125, %v335_v11  ;;  %v353_v18 = vsub.f32 %v698_v46, %v337_v9 }
 0x195   :  { %v354_v19 = vadd.f32 1e-05, %v344_v16  ;;  %v343_v20 = vsub.f32 %v339_v17, %v341_v12  ;;  %v381_v30 = vpop.permute.xlu1 %380 }
 0x197   :  { %545 = vrsqrt.f32 %v354_v19  ;;  %v345_v21 = vmax.f32 %v343_v20, 0.0 }
 0x199   :  { %v355_v22 = vadd.f32 1e-05, %v345_v21 }
 0x19b   :  { %547 = vrsqrt.f32 %v355_v22 }
 0x1a1   :  { %v546_v24 = vpop.eup %545 }
 0x1a2   :  { %v358_v25 = vmul.f32 %v546_v24, %v304_v23 }
 0x1a4   :  { %362 = vperm.xlu0 %494, %v358_v25  }
 0x1a5   :  { %v548_v27 = vpop.eup %547 }
 0x1a6   :  { %v359_v28 = vmul.f32 %v548_v27, %v305_v26 }
 0x1a8   :  { %367 = vperm.xlu1 %495, %v359_v28  }
 0x1ac   :  { %385 = vperm.xlu1 %495, %v307_v29  }
 0x223   :  { %v363_v31 = vpop.permute.xlu0 %362 }
 0x224   :  { %v370_v32 = vmul.f32 %v363_v31, %v346_v3  ;;  %v371_v33 = vmul.f32 %v363_v31, %v347_v4  ;;  %v372_v34 = vmul.f32 %v363_v31, %v348_v5  ;;  %v373_v35 = vmul.f32 %v363_v31, %v349_v8 }
 0x226   :  { %v388_v36 = vadd.f32 %v381_v30, %v370_v32  ;;  %v389_v37 = vadd.f32 %v381_v30, %v371_v33  ;;  %v390_v38 = vadd.f32 %v381_v30, %v372_v34  ;;  %v391_v39 = vadd.f32 %v381_v30, %v373_v35 }
 0x227   :  { %v368_v40 = vpop.permute.xlu1 %367 }
 0x228   :  { %vm396_vm0 = vcmp.ge.f32.partialorder %v388_v36, 0.0  ;;  %vm397_vm1 = vcmp.ge.f32.partialorder %v389_v37, 0.0  ;;  %vm398_vm2 = vcmp.ge.f32.partialorder %v390_v38, 0.0  ;;  %vm399_vm3 = vcmp.ge.f32.partialorder %v391_v39, 0.0 }
 0x229   :  { %v404_v41 = vmul.f32 0.2, %v388_v36  ;;  %v405_v42 = vmul.f32 0.2, %v389_v37  ;;  %v406_v43 = vmul.f32 0.2, %v390_v38  ;;  %v374_v45 = vmul.f32 %v368_v40, %v350_v13 }
 0x22a   :  { %v407_v44 = vmul.f32 0.2, %v391_v39  ;;  %v375_v46 = vmul.f32 %v368_v40, %v351_v14  ;;  %v376_v47 = vmul.f32 %v368_v40, %v352_v15  ;;  %v377_v51 = vmul.f32 %v368_v40, %v353_v18 }
 0x22b   :  { %v412_v48 = vsel %vm396_vm0, %v388_v36, %v404_v41  ;;  %v413_v49 = vsel %vm397_vm1, %v389_v37, %v405_v42  ;;  %v414_v50 = vsel %vm398_vm2, %v390_v38, %v406_v43  ;;  %v386_v52 = vpop.permute.xlu1 %385 }
 0x22c   :  { %v415_v53 = vsel %vm399_vm3, %v391_v39, %v407_v44  ;;  %v489_v54 = vpack.c.bf16 %v413_v49, %v412_v48  ;;  %v392_v55 = vadd.f32 %v386_v52, %v374_v45  ;;  %v393_v56 = vadd.f32 %v386_v52, %v375_v46 }
 0x22d   :  { %v490_v57 = vpack.c.bf16 %v415_v53, %v414_v50  ;;  %v394_v58 = vadd.f32 %v386_v52, %v376_v47  ;;  %v395_v59 = vadd.f32 %v386_v52, %v377_v51 }
 0x22e   :  { %444 = vst [vmem:[%s750_s4] sm:$0xff] %v489_v54  ;;  %vm400_vm4 = vcmp.ge.f32.partialorder %v392_v55, 0.0  ;;  %vm401_vm5 = vcmp.ge.f32.partialorder %v393_v56, 0.0  ;;  %v408_v60 = vmul.f32 0.2, %v392_v55  ;;  %v409_v61 = vmul.f32 0.2, %v393_v56 }
 0x22f   :  { %445 = vst [vmem:[%s750_s4 + $0x8] sm:$0xff] %v490_v57  ;;  %vm402_vm6 = vcmp.ge.f32.partialorder %v394_v58, 0.0  ;;  %vm403_vm7 = vcmp.ge.f32.partialorder %v395_v59, 0.0  ;;  %v410_v62 = vmul.f32 0.2, %v394_v58 }
 0x230   :  { %v411_v63 = vmul.f32 0.2, %v395_v59  ;;  %v416_v0 = vsel %vm400_vm4, %v392_v55, %v408_v60  ;;  %v417_v1 = vsel %vm401_vm5, %v393_v56, %v409_v61 }
 0x231   :  { %v418_v2 = vsel %vm402_vm6, %v394_v58, %v410_v62  ;;  %v491_v4 = vpack.c.bf16 %v417_v1, %v416_v0 }
 0x232   :  { %v419_v3 = vsel %vm403_vm7, %v395_v59, %v411_v63 }
 0x233   :  { %v492_v5 = vpack.c.bf16 %v419_v3, %v418_v2  ;;  %446 = vst [vmem:[%s750_s4 + $0x10] sm:$0xff] %v491_v4 }
 0x235   :  { %447 = vst [vmem:[%s750_s4 + $0x18] sm:$0xff] %v492_v5 }

// kernel: discriminator_forward.6
= control target key start
LH: loop header
LB: loop body
LE: loop exit
PB: predicated region body
PF: predicated region fallthrough
CT: control target
= control target key end

     0   :  { %v483_v36 = vmov 0   ;;  %s633_s1 = inlined_call_operand.vmem [shape: bf16[256,128], index: 1, kind: input, shape index: {}]   ;;  %s634_s0 = inlined_call_operand.vmem [shape: bf16[32,256], index: 0, kind: input, shape index: {}]   ;;  %s635_s3 = inlined_call_operand.vmem [shape: f32[32,1], index: 3, kind: input, shape index: {}]   ;;  %s636_s2 = inlined_call_operand.vmem [shape: f32[32,1], index: 2, kind: input, shape index: {}]   ;;  %s637_s4 = inlined_call_operand.vmem [shape: bf16[32,128], index: 4, kind: output, shape index: {}]  }
   0x1   :  { %v453_v0 = vld [vmem:[%s633_s1 + $0x40] sm:$0xff]   ;;  %v455_v2 = vld [vmem:[%s633_s1 + $0x48] sm:$0xff]   ;;  %v457_v4 = vld [vmem:[%s633_s1 + $0x50] sm:$0xff]   ;;  %452 = vset.pattern.permute.xlu1 %v483_v36  ;;  %451 = vset.pattern.permute.xlu0 %v483_v36 }
   0x2   :  { %v454_v1 = vld [vmem:[%s633_s1] sm:$0xff]   ;;  %406 = vmatprep.subr.bf16.mxu0 %v453_v0  ;;  %434 = vmatprep.subr.bf16.mxu1 %v453_v0  ;;  %v456_v3 = vld [vmem:[%s633_s1 + $0x8] sm:$0xff]   ;;  %v458_v5 = vld [vmem:[%s633_s1 + $0x10] sm:$0xff]  }
   0x3   :  { %407 = vmatpush3.bf16.msra.mxu0 %v454_v1  ;;  %442 = vmatpush3.bf16.msra.mxu1 %v454_v1  ;;  %v459_v6 = vld [vmem:[%s633_s1 + $0x58] sm:$0xff]   ;;  %v461_v8 = vld [vmem:[%s633_s1 + $0x60] sm:$0xff]   ;;  %v463_v10 = vld [vmem:[%s633_s1 + $0x68] sm:$0xff]  }
   0x4   :  { %408 = vmatprep.subr.bf16.mxu0 %v455_v2  ;;  %435 = vmatprep.subr.bf16.mxu1 %v455_v2  ;;  %v460_v7 = vld [vmem:[%s633_s1 + $0x18] sm:$0xff]   ;;  %v462_v9 = vld [vmem:[%s633_s1 + $0x20] sm:$0xff]   ;;  %v464_v13 = vld [vmem:[%s633_s1 + $0x28] sm:$0xff]  }
   0x5   :  { %v471_v11 = vld [vmem:[%s634_s0 + $0x4] ss:$8 sps:$4 sm:$0xff]   ;;  %v474_v12 = vld [vmem:[%s634_s0 + $0x14] ss:$8 sps:$4 sm:$0xff]   ;;  %v469_v18 = vld [vmem:[%s634_s0] ss:$8 sps:$4 sm:$0xff]  }
   0x6   :  { %v465_v14 = vld [vmem:[%s633_s1 + $0x70] sm:$0xff]   ;;  %202 = vmatprep.mubr.bf16.mxu0 %v471_v11  ;;  %210 = vmatprep.mubr.bf16.mxu1 %v474_v12  ;;  %v467_v16 = vld [vmem:[%s633_s1 + $0x78] sm:$0xff]   ;;  %v223_v37 = vld [vmem:[%s635_s3] sm:$0xff] }
   0x7   :  { %409 = vmatpush3.bf16.msra.mxu0 %v456_v3  ;;  %443 = vmatpush3.bf16.msra.mxu1 %v456_v3  ;;  %v466_v15 = vld [vmem:[%s633_s1 + $0x30] sm:$0xff]   ;;  %v468_v17 = vld [vmem:[%s633_s1 + $0x38] sm:$0xff]   ;;  %v224_v38 = vld [vmem:[%s635_s3 + $0x8] sm:$0xff] }
   0x8   :  { %410 = vmatprep.subr.bf16.mxu0 %v457_v4  ;;  %436 = vmatprep.subr.bf16.mxu1 %v457_v4  ;;  %v472_v19 = vld [vmem:[%s634_s0 + $0x10] ss:$8 sps:$4 sm:$0xff]  }
   0x9   :  { %v225_v39 = vld [vmem:[%s635_s3 + $0x10] sm:$0xff] }
   0xa   :  { %v221_v11 = vld [vmem:[%s636_s2 + $0x10] sm:$0xff] }
   0xb   :  { %411 = vmatpush3.bf16.msra.mxu0 %v458_v5  ;;  %444 = vmatpush3.bf16.msra.mxu1 %v458_v5 }
   0xc   :  { %412 = vmatprep.subr.bf16.mxu0 %v459_v6  ;;  %437 = vmatprep.subr.bf16.mxu1 %v459_v6 }
   0xf   :  { %413 = vmatpush3.bf16.msra.mxu0 %v460_v7  ;;  %445 = vmatpush3.bf16.msra.mxu1 %v460_v7 }
  0x10   :  { %414 = vmatprep.subr.bf16.mxu0 %v461_v8  ;;  %438 = vmatprep.subr.bf16.mxu1 %v461_v8  ;;  %v219_v8 = vld [vmem:[%s636_s2] sm:$0xff] }
  0x13   :  { %415 = vmatpush3.bf16.msra.mxu0 %v462_v9  ;;  %446 = vmatpush3.bf16.msra.mxu1 %v462_v9 }
  0x14   :  { %416 = vmatprep.subr.bf16.mxu0 %v463_v10  ;;  %439 = vmatprep.subr.bf16.mxu1 %v463_v10 }
  0x17   :  { %417 = vmatpush3.bf16.msra.mxu0 %v464_v13  ;;  %447 = vmatpush3.bf16.msra.mxu1 %v464_v13 }
  0x18   :  { %418 = vmatprep.subr.bf16.mxu0 %v465_v14  ;;  %440 = vmatprep.subr.bf16.mxu1 %v465_v14 }
  0x1b   :  { %419 = vmatpush3.bf16.msra.mxu0 %v466_v15  ;;  %448 = vmatpush3.bf16.msra.mxu1 %v466_v15  ;;  %v220_v15 = vld [vmem:[%s636_s2 + $0x8] sm:$0xff] }
  0x1c   :  { %420 = vmatprep.subr.bf16.mxu0 %v467_v16  ;;  %441 = vmatprep.subr.bf16.mxu1 %v467_v16 }
  0x1f   :  { %421 = vmatpush3.bf16.msra.mxu0 %v468_v17  ;;  %449 = vmatpush3.bf16.msra.mxu1 %v468_v17 }
  0x22   :  { %203 = vmatmul.mubr.bf16.vlgmr.msra.gmra.mrb[0].mxu0 %v469_v18  ;;  %211 = vmatmul.mubr.bf16.vlgmr.msra.gmra.mrb[0].mxu1 %v472_v19  ;;  %v222_v18 = vld [vmem:[%s636_s2 + $0x18] sm:$0xff] }
  0xf5   :  { %v422_v20 = vpop.f32.mrb[0].mxu0  ;;  %v428_v21 = vpop.f32.mrb[0].mxu1 }
  0xf6   :  { %v423_v22 = vpop.f32.mrb[1].mxu0  ;;  %v429_v23 = vpop.f32.mrb[1].mxu1 }
  0xf7   :  { %v569_v24 = vadd.f32 %v423_v22, %v422_v20  ;;  %v571_v25 = vadd.f32 %v429_v23, %v428_v21  ;;  %v425_v26 = vpop.f32.mrb[2].mxu0  ;;  %v431_v27 = vpop.f32.mrb[2].mxu1  ;;  %v226_v20 = vld [vmem:[%s635_s3 + $0x18] sm:$0xff] }
  0xf8   :  { %v426_v28 = vpop.f32.mrb[3].mxu0  ;;  %v432_v29 = vpop.f32.mrb[3].mxu1 }
  0xf9   :  { %v573_v30 = vadd.f32 %v426_v28, %v425_v26  ;;  %231 = vadd.xlane.f32.xlu1 %v571_v25  ;;  %227 = vadd.xlane.f32.xlu0 %v569_v24  ;;  %v577_v31 = vadd.f32 %v432_v29, %v431_v27  ;;  %v235_v33 = vmul.f32 %v569_v24, %v569_v24 }
  0xfa   :  { %v237_v35 = vmul.f32 %v571_v25, %v571_v25 }
  0xfb   :  { %v236_v32 = vmul.f32 %v573_v30, %v573_v30  ;;  %v238_v34 = vmul.f32 %v577_v31, %v577_v31 }
  0xfd   :  { %233 = vadd.xlane.f32.xlu1 %v577_v31  ;;  %229 = vadd.xlane.f32.xlu0 %v573_v30 }
 0x101   :  { %241 = vadd.xlane.f32.xlu1 %v236_v32  ;;  %239 = vadd.xlane.f32.xlu0 %v235_v33 }
 0x105   :  { %245 = vadd.xlane.f32.xlu1 %v238_v34  ;;  %243 = vadd.xlane.f32.xlu0 %v237_v35 }
 0x116   :  { %309 = vperm.xlu1 %452, %v223_v37  }
 0x11a   :  { %314 = vperm.xlu1 %452, %v224_v38  }
 0x11e   :  { %319 = vperm.xlu1 %452, %v225_v39  }
 0x186   :  { %v232_v40 = vpop.xlane.xlu1 %231  ;;  %v228_v41 = vpop.xlane.xlu0 %227 }
 0x187   :  { %v247_v44 = vmul.f32 0.0078125, %v228_v41  ;;  %v249_v52 = vmul.f32 0.0078125, %v232_v40 }
 0x189   :  { %v255_v48 = vmul.f32 %v247_v44, %v247_v44  ;;  %v257_v58 = vmul.f32 %v249_v52, %v249_v52  ;;  %v267_v27 = vsub.f32 %v569_v24, %v247_v44  ;;  %v269_v33 = vsub.f32 %v571_v25, %v249_v52 }
 0x18a   :  { %v234_v42 = vpop.xlane.xlu1 %233  ;;  %v230_v43 = vpop.xlane.xlu0 %229 }
 0x18b   :  { %v598_v45 = vmul.f32 0.0078125, %v230_v43  ;;  %v602_v54 = vmul.f32 0.0078125, %v234_v42 }
 0x18d   :  { %v256_v51 = vmul.f32 %v598_v45, %v598_v45  ;;  %v258_v62 = vmul.f32 %v602_v54, %v602_v54  ;;  %v268_v34 = vsub.f32 %v573_v30, %v598_v45  ;;  %v270_v24 = vsub.f32 %v577_v31, %v602_v54 }
 0x18e   :  { %v242_v46 = vpop.xlane.xlu1 %241  ;;  %v240_v47 = vpop.xlane.xlu0 %239 }
 0x18f   :  { %v252_v49 = vmul.f32 0.0078125, %v242_v46  ;;  %v251_v50 = vmul.f32 0.0078125, %v240_v47 }
 0x191   :  { %v259_v53 = vsub.f32 %v251_v50, %v255_v48  ;;  %v260_v55 = vsub.f32 %v252_v49, %v256_v51 }
 0x192   :  { %v246_v56 = vpop.xlane.xlu1 %245  ;;  %v244_v57 = vpop.xlane.xlu0 %243 }
 0x193   :  { %v263_v59 = vmax.f32 %v259_v53, 0.0  ;;  %v254_v60 = vmul.f32 0.0078125, %v246_v56  ;;  %v253_v61 = vmul.f32 0.0078125, %v244_v57  ;;  %v264_v1 = vmax.f32 %v260_v55, 0.0 }
 0x195   :  { %v271_v63 = vadd.f32 1e-05, %v263_v59  ;;  %v261_v0 = vsub.f32 %v253_v61, %v257_v58  ;;  %v262_v2 = vsub.f32 %v254_v60, %v258_v62  ;;  %v272_v5 = vadd.f32 1e-05, %v264_v1 }
 0x196   :  { %v310_v21 = vpop.permute.xlu1 %309 }
 0x197   :  { %v265_v3 = vmax.f32 %v261_v0, 0.0  ;;  %475 = vrsqrt.f32 %v271_v63  ;;  %v266_v6 = vmax.f32 %v262_v2, 0.0 }
 0x199   :  { %v273_v4 = vadd.f32 1e-05, %v265_v3  ;;  %v274_v7 = vadd.f32 1e-05, %v266_v6 }
 0x19a   :  { %v315_v22 = vpop.permute.xlu1 %314 }
 0x19b   :  { %477 = vrsqrt.f32 %v273_v4 }
 0x19c   :  { %479 = vrsqrt.f32 %v272_v5 }
 0x19d   :  { %481 = vrsqrt.f32 %v274_v7 }
 0x19e   :  { %v320_v23 = vpop.permute.xlu1 %319 }
 0x1a1   :  { %v476_v9 = vpop.eup %475 }
 0x1a2   :  { %v279_v10 = vmul.f32 %v476_v9, %v219_v8 }
 0x1a4   :  { %285 = vperm.xlu0 %451, %v279_v10  }
 0x1a5   :  { %v478_v12 = vpop.eup %477 }
 0x1a6   :  { %v281_v13 = vmul.f32 %v478_v12, %v221_v11  ;;  %v480_v14 = vpop.eup %479 }
 0x1a7   :  { %v280_v16 = vmul.f32 %v480_v14, %v220_v15  ;;  %v482_v17 = vpop.eup %481 }
 0x1a8   :  { %295 = vperm.xlu1 %452, %v281_v13   ;;  %v282_v19 = vmul.f32 %v482_v17, %v222_v18 }
 0x1ac   :  { %290 = vperm.xlu1 %452, %v280_v16  }
 0x1b0   :  { %300 = vperm.xlu1 %452, %v282_v19  }
 0x1b4   :  { %324 = vperm.xlu1 %452, %v226_v20  }
 0x223   :  { %v286_v26 = vpop.permute.xlu0 %285 }
 0x224   :  { %v303_v28 = vmul.f32 %v286_v26, %v267_v27 }
 0x226   :  { %v327_v32 = vadd.f32 %v310_v21, %v303_v28 }
 0x227   :  { %v296_v29 = vpop.permute.xlu1 %295 }
 0x228   :  { %v305_v36 = vmul.f32 %v296_v29, %v269_v33  ;;  %v335_v38 = vmul.f32 0.2, %v327_v32  ;;  %vm331_vm0 = vcmp.ge.f32.partialorder %v327_v32, 0.0 }
 0x22a   :  { %v329_v41 = vadd.f32 %v320_v23, %v305_v36  ;;  %v339_v43 = vsel %vm331_vm0, %v327_v32, %v335_v38 }
 0x22b   :  { %v291_v35 = vpop.permute.xlu1 %290 }
 0x22c   :  { %v304_v37 = vmul.f32 %v291_v35, %v268_v34  ;;  %v337_v48 = vmul.f32 0.2, %v329_v41  ;;  %vm333_vm2 = vcmp.ge.f32.partialorder %v329_v41, 0.0 }
 0x22e   :  { %v328_v39 = vadd.f32 %v315_v22, %v304_v37  ;;  %v341_v49 = vsel %vm333_vm2, %v329_v41, %v337_v48 }
 0x22f   :  { %v301_v40 = vpop.permute.xlu1 %300 }
 0x230   :  { %vm332_vm1 = vcmp.ge.f32.partialorder %v328_v39, 0.0  ;;  %v336_v42 = vmul.f32 0.2, %v328_v39  ;;  %v306_v46 = vmul.f32 %v301_v40, %v270_v24 }
 0x232   :  { %v340_v44 = vsel %vm332_vm1, %v328_v39, %v336_v42 }
 0x233   :  { %v398_v25 = vpack.c.bf16 %v340_v44, %v339_v43  ;;  %v325_v47 = vpop.permute.xlu1 %324 }
 0x234   :  { %v330_v30 = vadd.f32 %v325_v47, %v306_v46 }
 0x235   :  { %399 = vst [vmem:[%s637_s4] sm:$0xff] %v398_v25  }
 0x236   :  { %vm334_vm3 = vcmp.ge.f32.partialorder %v330_v30, 0.0  ;;  %v338_v45 = vmul.f32 0.2, %v330_v30 }
 0x238   :  { %v342_v50 = vsel %vm334_vm3, %v330_v30, %v338_v45 }
 0x239   :  { %v403_v51 = vpack.c.bf16 %v342_v50, %v341_v49 }
 0x23b   :  { %405 = vst [vmem:[%s637_s4 + $0x8] sm:$0xff] %v403_v51  }

// kernel: discriminator_forward.7
= control target key start
LH: loop header
LB: loop body
LE: loop exit
PB: predicated region body
PF: predicated region fallthrough
CT: control target
= control target key end

     0   :  { %v1037_v48 = vmov 0   ;;  %vm522_vm0 = vcmask 261120   ;;  %vm810_vm9 = vcmask 254976   ;;  %vm824_vm10 = vcmask 1024   ;;  %s1407_s1 = inlined_call_operand.vmem [shape: bf16[512,32], index: 1, kind: input, shape index: {}]   ;;  %s1408_s0 = inlined_call_operand.vmem [shape: bf16[64,512], index: 0, kind: input, shape index: {}]   ;;  %s1409_s3 = inlined_call_operand.vmem [shape: f32[64,1], index: 3, kind: input, shape index: {}]   ;;  %s1410_s2 = inlined_call_operand.vmem [shape: f32[64,1], index: 2, kind: input, shape index: {}]   ;;  %s1411_s4 = inlined_call_operand.vmem [shape: f32[64,32], index: 4, kind: input, shape index: {}]   ;;  %s1412_s5 = inlined_call_operand.vmem [shape: f32[2,32], index: 5, kind: input, shape index: {}]   ;;  %s1413_s6 = inlined_call_operand.vmem [shape: f32[2,1], index: 6, kind: output, shape index: {}]  }
   0x1   :  { %v961_v0 = vld [vmem:[%s1407_s1 + $0x40] sm:$0xff]   ;;  %v965_v4 = vld [vmem:[%s1407_s1 + $0x48] sm:$0xff]   ;;  %v969_v8 = vld [vmem:[%s1407_s1 + $0x50] sm:$0xff]   ;;  %959 = vset.pattern.permute.xlu1 %v1037_v48  ;;  %960 = vset.pattern.permute.xlu0 %v1037_v48 }
   0x2   :  { %v962_v1 = vld [vmem:[%s1407_s1 + $0xc0] sm:$0xff]   ;;  %878 = vmatprep.subr.bf16.mxu0 %v961_v0  ;;  %v966_v5 = vld [vmem:[%s1407_s1 + $0xc8] sm:$0xff]   ;;  %v970_v9 = vld [vmem:[%s1407_s1 + $0xd0] sm:$0xff]  }
   0x3   :  { %v963_v2 = vld [vmem:[%s1407_s1] sm:$0xff]   ;;  %918 = vmatprep.subr.bf16.mxu1 %v962_v1  ;;  %v967_v6 = vld [vmem:[%s1407_s1 + $0x8] sm:$0xff]   ;;  %v971_v10 = vld [vmem:[%s1407_s1 + $0x10] sm:$0xff]  }
   0x4   :  { %v964_v3 = vld [vmem:[%s1407_s1 + $0x80] sm:$0xff]   ;;  %879 = vmatpush3.bf16.msra.mxu0 %v963_v2  ;;  %v968_v7 = vld [vmem:[%s1407_s1 + $0x88] sm:$0xff]   ;;  %v972_v11 = vld [vmem:[%s1407_s1 + $0x90] sm:$0xff]  }
   0x5   :  { %919 = vmatpush3.bf16.msra.mxu1 %v964_v3  ;;  %880 = vmatprep.subr.bf16.mxu0 %v965_v4  ;;  %v973_v12 = vld [vmem:[%s1407_s1 + $0x58] sm:$0xff]   ;;  %v977_v16 = vld [vmem:[%s1407_s1 + $0x60] sm:$0xff]   ;;  %v981_v20 = vld [vmem:[%s1407_s1 + $0x68] sm:$0xff]  }
   0x6   :  { %920 = vmatprep.subr.bf16.mxu1 %v966_v5  ;;  %v974_v13 = vld [vmem:[%s1407_s1 + $0xd8] sm:$0xff]   ;;  %v978_v17 = vld [vmem:[%s1407_s1 + $0xe0] sm:$0xff]   ;;  %v982_v21 = vld [vmem:[%s1407_s1 + $0xe8] sm:$0xff]  }
   0x7   :  { %v975_v14 = vld [vmem:[%s1407_s1 + $0x18] sm:$0xff]   ;;  %v979_v18 = vld [vmem:[%s1407_s1 + $0x20] sm:$0xff]   ;;  %v983_v22 = vld [vmem:[%s1407_s1 + $0x28] sm:$0xff]  }
   0x8   :  { %881 = vmatpush3.bf16.msra.mxu0 %v967_v6  ;;  %v976_v15 = vld [vmem:[%s1407_s1 + $0x98] sm:$0xff]   ;;  %v980_v19 = vld [vmem:[%s1407_s1 + $0xa0] sm:$0xff]   ;;  %v984_v23 = vld [vmem:[%s1407_s1 + $0xa8] sm:$0xff]  }
   0x9   :  { %921 = vmatpush3.bf16.msra.mxu1 %v968_v7  ;;  %882 = vmatprep.subr.bf16.mxu0 %v969_v8  ;;  %v985_v24 = vld [vmem:[%s1407_s1 + $0x70] sm:$0xff]   ;;  %v989_v28 = vld [vmem:[%s1407_s1 + $0x78] sm:$0xff]  }
   0xa   :  { %922 = vmatprep.subr.bf16.mxu1 %v970_v9  ;;  %v986_v25 = vld [vmem:[%s1407_s1 + $0xf0] sm:$0xff]   ;;  %v990_v29 = vld [vmem:[%s1407_s1 + $0xf8] sm:$0xff]  }
   0xb   :  { %v987_v26 = vld [vmem:[%s1407_s1 + $0x30] sm:$0xff]   ;;  %v991_v30 = vld [vmem:[%s1407_s1 + $0x38] sm:$0xff]  }
   0xc   :  { %883 = vmatpush3.bf16.msra.mxu0 %v971_v10  ;;  %v988_v27 = vld [vmem:[%s1407_s1 + $0xb0] sm:$0xff]   ;;  %v992_v31 = vld [vmem:[%s1407_s1 + $0xb8] sm:$0xff]  }
   0xd   :  { %923 = vmatpush3.bf16.msra.mxu1 %v972_v11  ;;  %884 = vmatprep.subr.bf16.mxu0 %v973_v12  ;;  %v993_v32 = vld [vmem:[%s1408_s0] ss:$16 sps:$4 sm:$0xff]   ;;  %v995_v33 = vld [vmem:[%s1408_s0 + $0x4] ss:$16 sps:$4 sm:$0xff]   ;;  %v996_v34 = vld [vmem:[%s1408_s0 + $0x8] ss:$16 sps:$4 sm:$0xff]  }
   0xe   :  { %924 = vmatprep.subr.bf16.mxu1 %v974_v13  ;;  %v998_v35 = vld [vmem:[%s1408_s0 + $0xc] ss:$16 sps:$4 sm:$0xff]   ;;  %408 = vmatprep.mubr.bf16.mxu0 %v995_v33  ;;  %v999_v36 = vld [vmem:[%s1408_s0 + $0x24] ss:$16 sps:$4 sm:$0xff]   ;;  %v1003_v38 = vld [vmem:[%s1408_s0 + $0x20] ss:$16 sps:$4 sm:$0xff]  }
   0xf   :  { %473 = vmatprep.mubr.bf16.mxu1 %v998_v35  ;;  %v1001_v37 = vld [vmem:[%s1408_s0 + $0x2c] ss:$16 sps:$4 sm:$0xff]   ;;  %v1004_v39 = vld [vmem:[%s1408_s0 + $0x28] ss:$16 sps:$4 sm:$0xff]   ;;  %v1005_v40 = vld [vmem:[%s1408_s0 + $0x44] ss:$16 sps:$4 sm:$0xff]  }
  0x10   :  { %885 = vmatpush3.bf16.msra.mxu0 %v975_v14  ;;  %v1007_v41 = vld [vmem:[%s1408_s0 + $0x4c] ss:$16 sps:$4 sm:$0xff]   ;;  %v1009_v42 = vld [vmem:[%s1408_s0 + $0x40] ss:$16 sps:$4 sm:$0xff]   ;;  %v1010_v43 = vld [vmem:[%s1408_s0 + $0x48] ss:$16 sps:$4 sm:$0xff]  }
  0x11   :  { %925 = vmatpush3.bf16.msra.mxu1 %v976_v15  ;;  %886 = vmatprep.subr.bf16.mxu0 %v977_v16  ;;  %v1011_v44 = vld [vmem:[%s1408_s0 + $0x64] ss:$16 sps:$4 sm:$0xff]   ;;  %v1013_v45 = vld [vmem:[%s1408_s0 + $0x6c] ss:$16 sps:$4 sm:$0xff]   ;;  %v1015_v46 = vld [vmem:[%s1408_s0 + $0x60] ss:$16 sps:$4 sm:$0xff]  }
  0x12   :  { %926 = vmatprep.subr.bf16.mxu1 %v978_v17  ;;  %v1016_v47 = vld [vmem:[%s1408_s0 + $0x68] ss:$16 sps:$4 sm:$0xff]  }
  0x14   :  { %887 = vmatpush3.bf16.msra.mxu0 %v979_v18 }
  0x15   :  { %927 = vmatpush3.bf16.msra.mxu1 %v980_v19  ;;  %888 = vmatprep.subr.bf16.mxu0 %v981_v20 }
  0x16   :  { %928 = vmatprep.subr.bf16.mxu1 %v982_v21 }
  0x18   :  { %889 = vmatpush3.bf16.msra.mxu0 %v983_v22 }
  0x19   :  { %929 = vmatpush3.bf16.msra.mxu1 %v984_v23  ;;  %890 = vmatprep.subr.bf16.mxu0 %v985_v24 }
  0x1a   :  { %930 = vmatprep.subr.bf16.mxu1 %v986_v25 }
  0x1c   :  { %891 = vmatpush3.bf16.msra.mxu0 %v987_v26 }
  0x1d   :  { %931 = vmatpush3.bf16.msra.mxu1 %v988_v27  ;;  %892 = vmatprep.subr.bf16.mxu0 %v989_v28 }
  0x1e   :  { %932 = vmatprep.subr.bf16.mxu1 %v990_v29 }
  0x20   :  { %893 = vmatpush3.bf16.msra.mxu0 %v991_v30 }
  0x21   :  { %933 = vmatpush3.bf16.msra.mxu1 %v992_v31 }
  0x23   :  { %409 = vmatmul.mubr.bf16.vlgmr.msra.gmra.mrb[0].mxu0 %v993_v32 }
  0x24   :  { %474 = vmatmul.mubr.bf16.vlgmr.msra.gmra.mrb[0].mxu1 %v996_v34  ;;  %416 = vmatprep.mubr.bf16.mxu0 %v999_v36 }
  0x25   :  { %481 = vmatprep.mubr.bf16.mxu1 %v1001_v37 }
  0x2b   :  { %417 = vmatmul.mubr.bf16.gmra.mrb[4].mxu0 %v1003_v38 }
  0x2c   :  { %482 = vmatmul.mubr.bf16.gmra.mrb[4].mxu1 %v1004_v39  ;;  %424 = vmatprep.mubr.bf16.mxu0 %v1005_v40 }
  0x2d   :  { %489 = vmatprep.mubr.bf16.mxu1 %v1007_v41 }
  0x33   :  { %425 = vmatmul.mubr.bf16.gmra.mrb[8].mxu0 %v1009_v42 }
  0x34   :  { %490 = vmatmul.mubr.bf16.gmra.mrb[8].mxu1 %v1010_v43  ;;  %432 = vmatprep.mubr.bf16.mxu0 %v1011_v44 }
  0x35   :  { %497 = vmatprep.mubr.bf16.mxu1 %v1013_v45 }
  0x3b   :  { %433 = vmatmul.mubr.bf16.gmra.mrb[12].mxu0 %v1015_v46 }
  0x3c   :  { %498 = vmatmul.mubr.bf16.gmra.mrb[12].mxu1 %v1016_v47 }
  0xf6   :  { %v894_v49 = vpop.f32.mrb[0].mxu0 }
  0xf7   :  { %v934_v50 = vpop.f32.mrb[0].mxu1  ;;  %v895_v51 = vpop.f32.mrb[1].mxu0 }
  0xf8   :  { %v896_v52 = vadd.f32 %v895_v51, %v894_v49  ;;  %v935_v53 = vpop.f32.mrb[1].mxu1  ;;  %v897_v54 = vpop.f32.mrb[2].mxu0 }
  0xf9   :  { %v936_v55 = vadd.f32 %v935_v53, %v934_v50  ;;  %v937_v56 = vpop.f32.mrb[2].mxu1  ;;  %v898_v57 = vpop.f32.mrb[3].mxu0 }
  0xfa   :  { %v899_v58 = vadd.f32 %v898_v57, %v897_v54  ;;  %v938_v59 = vpop.f32.mrb[3].mxu1 }
  0xfb   :  { %v1217_v60 = vadd.f32 %v936_v55, %v896_v52  ;;  %v939_v61 = vadd.f32 %v938_v59, %v937_v56 }
  0xfd   :  { %v1219_v62 = vadd.f32 %v939_v61, %v899_v58  ;;  %v523_v63 = vsel %vm522_vm0, %v1217_v60, 0.0  ;;  %v547_v0 = vmul.f32 %v1217_v60, %v1217_v60 }
  0xfe   :  { %524 = vadd.xlane.f32.xlu0 %v523_v63  ;;  %v900_v1 = vpop.f32.mrb[4].mxu0 }
  0xff   :  { %v940_v2 = vpop.f32.mrb[4].mxu1  ;;  %v901_v3 = vpop.f32.mrb[5].mxu0  ;;  %v555_v4 = vsel %vm522_vm0, %v547_v0, 0.0  ;;  %v526_v11 = vsel %vm522_vm0, %v1219_v62, 0.0  ;;  %v548_v12 = vmul.f32 %v1219_v62, %v1219_v62 }
 0x100   :  { %v902_v5 = vadd.f32 %v901_v3, %v900_v1  ;;  %v941_v6 = vpop.f32.mrb[5].mxu1  ;;  %556 = vadd.xlane.f32.xlu1 %v555_v4  ;;  %v903_v7 = vpop.f32.mrb[6].mxu0  ;;  %v514_v3 = vld [vmem:[%s1409_s3] sm:$0xff]  ;;  %v515_v4 = vld [vmem:[%s1409_s3 + $0x8] sm:$0xff] }
 0x101   :  { %v942_v8 = vadd.f32 %v941_v6, %v940_v2  ;;  %v943_v9 = vpop.f32.mrb[6].mxu1  ;;  %v904_v10 = vpop.f32.mrb[7].mxu0  ;;  %v558_v19 = vsel %vm522_vm0, %v548_v12, 0.0  ;;  %v517_v6 = vld [vmem:[%s1409_s3 + $0x18] sm:$0xff] }
 0x102   :  { %v905_v13 = vadd.f32 %v904_v10, %v903_v7  ;;  %v944_v14 = vpop.f32.mrb[7].mxu1  ;;  %527 = vadd.xlane.f32.xlu0 %v526_v11  ;;  %v518_v7 = vld [vmem:[%s1409_s3 + $0x20] sm:$0xff] }
 0x103   :  { %v1230_v15 = vadd.f32 %v942_v8, %v902_v5  ;;  %v945_v16 = vadd.f32 %v944_v14, %v943_v9  ;;  %v516_v5 = vld [vmem:[%s1409_s3 + $0x10] sm:$0xff] }
 0x105   :  { %v1232_v17 = vadd.f32 %v945_v16, %v905_v13  ;;  %v529_v18 = vsel %vm522_vm0, %v1230_v15, 0.0  ;;  %v549_v20 = vmul.f32 %v1230_v15, %v1230_v15 }
 0x106   :  { %530 = vadd.xlane.f32.xlu1 %v529_v18  ;;  %559 = vadd.xlane.f32.xlu0 %v558_v19  ;;  %v906_v21 = vpop.f32.mrb[8].mxu0 }
 0x107   :  { %v946_v22 = vpop.f32.mrb[8].mxu1  ;;  %v907_v23 = vpop.f32.mrb[9].mxu0  ;;  %v532_v30 = vsel %vm522_vm0, %v1232_v17, 0.0  ;;  %v561_v31 = vsel %vm522_vm0, %v549_v20, 0.0  ;;  %v550_v32 = vmul.f32 %v1232_v17, %v1232_v17 }
 0x108   :  { %v908_v24 = vadd.f32 %v907_v23, %v906_v21  ;;  %v947_v25 = vpop.f32.mrb[9].mxu1  ;;  %v909_v26 = vpop.f32.mrb[10].mxu0 }
 0x109   :  { %v948_v27 = vadd.f32 %v947_v25, %v946_v22  ;;  %v949_v28 = vpop.f32.mrb[10].mxu1  ;;  %v910_v29 = vpop.f32.mrb[11].mxu0  ;;  %v564_v39 = vsel %vm522_vm0, %v550_v32, 0.0 }
 0x10a   :  { %v911_v33 = vadd.f32 %v910_v29, %v909_v26  ;;  %v950_v34 = vpop.f32.mrb[11].mxu1  ;;  %533 = vadd.xlane.f32.xlu1 %v532_v30  ;;  %562 = vadd.xlane.f32.xlu0 %v561_v31 }
 0x10b   :  { %v1244_v35 = vadd.f32 %v948_v27, %v908_v24  ;;  %v951_v36 = vadd.f32 %v950_v34, %v949_v28 }
 0x10d   :  { %v1246_v37 = vadd.f32 %v951_v36, %v911_v33  ;;  %v535_v38 = vsel %vm522_vm0, %v1244_v35, 0.0  ;;  %v551_v40 = vmul.f32 %v1244_v35, %v1244_v35 }
 0x10e   :  { %536 = vadd.xlane.f32.xlu1 %v535_v38  ;;  %565 = vadd.xlane.f32.xlu0 %v564_v39  ;;  %v912_v41 = vpop.f32.mrb[12].mxu0 }
 0x10f   :  { %v952_v42 = vpop.f32.mrb[12].mxu1  ;;  %v913_v43 = vpop.f32.mrb[13].mxu0  ;;  %v538_v50 = vsel %vm522_vm0, %v1246_v37, 0.0  ;;  %v567_v51 = vsel %vm522_vm0, %v551_v40, 0.0  ;;  %v552_v52 = vmul.f32 %v1246_v37, %v1246_v37 }
 0x110   :  { %v914_v44 = vadd.f32 %v913_v43, %v912_v41  ;;  %v953_v45 = vpop.f32.mrb[13].mxu1  ;;  %v915_v46 = vpop.f32.mrb[14].mxu0 }
 0x111   :  { %v954_v47 = vadd.f32 %v953_v45, %v952_v42  ;;  %v955_v48 = vpop.f32.mrb[14].mxu1  ;;  %v916_v49 = vpop.f32.mrb[15].mxu0  ;;  %v570_v59 = vsel %vm522_vm0, %v552_v52, 0.0 }
 0x112   :  { %v917_v53 = vadd.f32 %v916_v49, %v915_v46  ;;  %v956_v54 = vpop.f32.mrb[15].mxu1  ;;  %539 = vadd.xlane.f32.xlu1 %v538_v50  ;;  %568 = vadd.xlane.f32.xlu0 %v567_v51 }
 0x113   :  { %v1258_v55 = vadd.f32 %v954_v47, %v914_v44  ;;  %v957_v56 = vadd.f32 %v956_v54, %v955_v48  ;;  %v506_v44 = vld [vmem:[%s1410_s2] sm:$0xff] }
 0x115   :  { %v1260_v57 = vadd.f32 %v957_v56, %v917_v53  ;;  %v541_v58 = vsel %vm522_vm0, %v1258_v55, 0.0  ;;  %v553_v61 = vmul.f32 %v1258_v55, %v1258_v55 }
 0x116   :  { %542 = vadd.xlane.f32.xlu1 %v541_v58  ;;  %571 = vadd.xlane.f32.xlu0 %v570_v59 }
 0x117   :  { %v544_v63 = vsel %vm522_vm0, %v1260_v57, 0.0  ;;  %v573_v0 = vsel %vm522_vm0, %v553_v61, 0.0  ;;  %v554_v1 = vmul.f32 %v1260_v57, %v1260_v57 }
 0x119   :  { %v576_v2 = vsel %vm522_vm0, %v554_v1, 0.0  ;;  %v507_v1 = vld [vmem:[%s1410_s2 + $0x8] sm:$0xff] }
 0x11a   :  { %545 = vadd.xlane.f32.xlu1 %v544_v63  ;;  %574 = vadd.xlane.f32.xlu0 %v573_v0 }
 0x11e   :  { %577 = vadd.xlane.f32.xlu1 %v576_v2 }
 0x12f   :  { %701 = vperm.xlu1 %959, %v514_v3  }
 0x133   :  { %706 = vperm.xlu1 %959, %v515_v4  }
 0x137   :  { %711 = vperm.xlu1 %959, %v516_v5  }
 0x13b   :  { %716 = vperm.xlu1 %959, %v517_v6  }
 0x13f   :  { %721 = vperm.xlu1 %959, %v518_v7  }
 0x18b   :  { %v525_v8 = vpop.xlane.xlu0 %524 }
 0x18c   :  { %v1288_v9 = vmul.f32 0.03125, %v525_v8 }
 0x18d   :  { %v557_v10 = vpop.xlane.xlu1 %556 }
 0x18e   :  { %v595_v11 = vmul.f32 %v1288_v9, %v1288_v9  ;;  %v587_v12 = vmul.f32 0.03125, %v557_v10 }
 0x18f   :  { %v528_v13 = vpop.xlane.xlu0 %527 }
 0x190   :  { %v603_v14 = vsub.f32 %v587_v12, %v595_v11  ;;  %v1292_v16 = vmul.f32 0.03125, %v528_v13  ;;  %v508_v13 = vld [vmem:[%s1410_s2 + $0x10] sm:$0xff] }
 0x192   :  { %v611_v18 = vmax.f32 %v603_v14, 0.0  ;;  %v596_v22 = vmul.f32 %v1292_v16, %v1292_v16 }
 0x193   :  { %v531_v19 = vpop.xlane.xlu1 %530  ;;  %v560_v20 = vpop.xlane.xlu0 %559 }
 0x194   :  { %v627_v21 = vadd.f32 1e-05, %v611_v18  ;;  %v1296_v23 = vmul.f32 0.03125, %v531_v19  ;;  %v588_v24 = vmul.f32 0.03125, %v560_v20 }
 0x196   :  { %1017 = vrsqrt.f32 %v627_v21  ;;  %v604_v25 = vsub.f32 %v588_v24, %v596_v22  ;;  %v597_v28 = vmul.f32 %v1296_v23, %v1296_v23 }
 0x197   :  { %v534_v26 = vpop.xlane.xlu1 %533  ;;  %v563_v27 = vpop.xlane.xlu0 %562 }
 0x198   :  { %v612_v29 = vmax.f32 %v604_v25, 0.0  ;;  %v1300_v30 = vmul.f32 0.03125, %v534_v26  ;;  %v589_v31 = vmul.f32 0.03125, %v563_v27  ;;  %v509_v26 = vld [vmem:[%s1410_s2 + $0x18] sm:$0xff] }
 0x19a   :  { %v628_v32 = vadd.f32 1e-05, %v612_v29  ;;  %v605_v33 = vsub.f32 %v589_v31, %v597_v28  ;;  %v598_v34 = vmul.f32 %v1300_v30, %v1300_v30 }
 0x19b   :  { %v537_v36 = vpop.xlane.xlu1 %536  ;;  %v566_v38 = vpop.xlane.xlu0 %565 }
 0x19c   :  { %1019 = vrsqrt.f32 %v628_v32  ;;  %v613_v39 = vmax.f32 %v605_v33, 0.0  ;;  %v1304_v40 = vmul.f32 0.03125, %v537_v36  ;;  %v590_v41 = vmul.f32 0.03125, %v566_v38  ;;  %v510_v33 = vld [vmem:[%s1410_s2 + $0x20] sm:$0xff] }
 0x19e   :  { %v629_v42 = vadd.f32 1e-05, %v613_v39  ;;  %v606_v43 = vsub.f32 %v590_v41, %v598_v34  ;;  %v599_v45 = vmul.f32 %v1304_v40, %v1304_v40  ;;  %v511_v39 = vld [vmem:[%s1410_s2 + $0x28] sm:$0xff] }
 0x19f   :  { %v540_v46 = vpop.xlane.xlu1 %539  ;;  %v569_v47 = vpop.xlane.xlu0 %568 }
 0x1a0   :  { %v1018_v48 = vpop.eup %1017  ;;  %1021 = vrsqrt.f32 %v629_v42  ;;  %v614_v49 = vmax.f32 %v606_v43, 0.0  ;;  %v1311_v50 = vmul.f32 0.03125, %v540_v46  ;;  %v591_v51 = vmul.f32 0.03125, %v569_v47  ;;  %v519_v42 = vld [vmem:[%s1409_s3 + $0x28] sm:$0xff]  ;;  %v520_v46 = vld [vmem:[%s1409_s3 + $0x30] sm:$0xff] }
 0x1a1   :  { %v643_v52 = vmul.f32 %v1018_v48, %v506_v44  ;;  %v512_v44 = vld [vmem:[%s1410_s2 + $0x30] sm:$0xff]  ;;  %v513_v48 = vld [vmem:[%s1410_s2 + $0x38] sm:$0xff] }
 0x1a2   :  { %v630_v53 = vadd.f32 1e-05, %v614_v49  ;;  %v607_v54 = vsub.f32 %v591_v51, %v599_v45  ;;  %v600_v56 = vmul.f32 %v1311_v50, %v1311_v50 }
 0x1a3   :  { %v543_v58 = vpop.xlane.xlu1 %542  ;;  %653 = vperm.xlu0 %960, %v643_v52   ;;  %v572_v59 = vpop.xlane.xlu0 %571  ;;  %v521_v52 = vld [vmem:[%s1409_s3 + $0x38] sm:$0xff] }
 0x1a4   :  { %1023 = vrsqrt.f32 %v630_v53  ;;  %v615_v61 = vmax.f32 %v607_v54, 0.0  ;;  %v1315_v63 = vmul.f32 0.03125, %v543_v58  ;;  %v592_v0 = vmul.f32 0.03125, %v572_v59 }
 0x1a5   :  { %v619_v59 = vsub.f32 %v1217_v60, %v1288_v9  ;;  %v621_v60 = vsub.f32 %v1230_v15, %v1296_v23  ;;  %v773_v15 = vld [vmem:[%s1411_s4 + $0x10] sm:$0xff] }
 0x1a6   :  { %v1020_v2 = vpop.eup %1019  ;;  %v631_v3 = vadd.f32 1e-05, %v615_v61  ;;  %v608_v4 = vsub.f32 %v592_v0, %v600_v56  ;;  %v601_v5 = vmul.f32 %v1315_v63, %v1315_v63 }
 0x1a7   :  { %v546_v6 = vpop.xlane.xlu1 %545  ;;  %v575_v7 = vpop.xlane.xlu0 %574  ;;  %v644_v8 = vmul.f32 %v1020_v2, %v507_v1 }
 0x1a8   :  { %1025 = vrsqrt.f32 %v631_v3  ;;  %v616_v10 = vmax.f32 %v608_v4, 0.0  ;;  %v1322_v11 = vmul.f32 0.03125, %v546_v6  ;;  %v593_v12 = vmul.f32 0.03125, %v575_v7  ;;  %v771_v7 = vld [vmem:[%s1411_s4] sm:$0xff] }
 0x1a9   :  { %658 = vperm.xlu1 %959, %v644_v8   ;;  %v620_v4 = vsub.f32 %v1219_v62, %v1292_v16 }
 0x1aa   :  { %v1022_v14 = vpop.eup %1021  ;;  %v632_v18 = vadd.f32 1e-05, %v616_v10  ;;  %v609_v19 = vsub.f32 %v593_v12, %v601_v5  ;;  %v602_v22 = vmul.f32 %v1322_v11, %v1322_v11  ;;  %v772_v12 = vld [vmem:[%s1411_s4 + $0x8] sm:$0xff] }
 0x1ab   :  { %v578_v20 = vpop.xlane.xlu1 %577  ;;  %v645_v21 = vmul.f32 %v1022_v14, %v508_v13 }
 0x1ac   :  { %1027 = vrsqrt.f32 %v632_v18  ;;  %v617_v24 = vmax.f32 %v609_v19, 0.0  ;;  %v594_v25 = vmul.f32 0.03125, %v578_v20  ;;  %v622_v19 = vsub.f32 %v1232_v17, %v1300_v30 }
 0x1ad   :  { %663 = vperm.xlu1 %959, %v645_v21  }
 0x1ae   :  { %v1024_v27 = vpop.eup %1023  ;;  %v633_v28 = vadd.f32 1e-05, %v617_v24  ;;  %v610_v29 = vsub.f32 %v594_v25, %v602_v22 }
 0x1af   :  { %v646_v31 = vmul.f32 %v1024_v27, %v509_v26  ;;  %v702_v53 = vpop.permute.xlu1 %701 }
 0x1b0   :  { %1029 = vrsqrt.f32 %v633_v28  ;;  %v618_v32 = vmax.f32 %v610_v29, 0.0  ;;  %v623_v29 = vsub.f32 %v1244_v35, %v1304_v40  ;;  %v775_v40 = vld [vmem:[%s1411_s4 + $0x20] sm:$0xff] }
 0x1b1   :  { %668 = vperm.xlu1 %959, %v646_v31   ;;  %v774_v31 = vld [vmem:[%s1411_s4 + $0x18] sm:$0xff] }
 0x1b2   :  { %v1026_v34 = vpop.eup %1025  ;;  %v634_v36 = vadd.f32 1e-05, %v618_v32 }
 0x1b3   :  { %v647_v38 = vmul.f32 %v1026_v34, %v510_v33  ;;  %v707_v54 = vpop.permute.xlu1 %706 }
 0x1b4   :  { %1031 = vrsqrt.f32 %v634_v36 }
 0x1b5   :  { %673 = vperm.xlu1 %959, %v647_v38  }
 0x1b6   :  { %v1028_v41 = vpop.eup %1027 }
 0x1b7   :  { %v648_v43 = vmul.f32 %v1028_v41, %v511_v39  ;;  %v712_v56 = vpop.permute.xlu1 %711  ;;  %v624_v41 = vsub.f32 %v1246_v37, %v1311_v50  ;;  %v776_v50 = vld [vmem:[%s1411_s4 + $0x28] sm:$0xff] }
 0x1b9   :  { %726 = vperm.xlu1 %959, %v519_v42   ;;  %678 = vperm.xlu0 %960, %v648_v43  }
 0x1ba   :  { %v1030_v45 = vpop.eup %1029 }
 0x1bb   :  { %v649_v47 = vmul.f32 %v1030_v45, %v512_v44  ;;  %v717_v58 = vpop.permute.xlu1 %716 }
 0x1bd   :  { %731 = vperm.xlu1 %959, %v520_v46   ;;  %683 = vperm.xlu0 %960, %v649_v47  }
 0x1be   :  { %v1032_v49 = vpop.eup %1031 }
 0x1bf   :  { %v650_v51 = vmul.f32 %v1032_v49, %v513_v48  ;;  %v722_v1 = vpop.permute.xlu1 %721 }
 0x1c1   :  { %688 = vperm.xlu0 %960, %v650_v51   ;;  %v625_v51 = vsub.f32 %v1258_v55, %v1315_v63  ;;  %v777_v55 = vld [vmem:[%s1411_s4 + $0x30] sm:$0xff] }
 0x1c5   :  { %736 = vperm.xlu0 %960, %v521_v52  }
 0x222   :  { %v654_v61 = vpop.permute.xlu0 %653 }
 0x223   :  { %v691_v0 = vmul.f32 %v654_v61, %v619_v59 }
 0x225   :  { %v739_v2 = vadd.f32 %v702_v53, %v691_v0 }
 0x227   :  { %v755_v3 = vmul.f32 0.2, %v739_v2  ;;  %vm747_vm1 = vcmp.ge.f32.partialorder %v739_v2, 0.0 }
 0x228   :  { %v659_v5 = vpop.permute.xlu1 %658 }
 0x229   :  { %v692_v6 = vmul.f32 %v659_v5, %v620_v4  ;;  %v763_v8 = vsel %vm747_vm1, %v739_v2, %v755_v3  ;;  %v626_v3 = vsub.f32 %v1260_v57, %v1322_v11 }
 0x22a   :  { %v779_v16 = vmul.f32 %v771_v7, %v763_v8 }
 0x22b   :  { %v740_v10 = vadd.f32 %v707_v54, %v692_v6 }
 0x22c   :  { %v664_v9 = vpop.permute.xlu1 %663  ;;  %v787_v24 = vsel %vm522_vm0, %v779_v16, 0.0 }
 0x22d   :  { %vm748_vm2 = vcmp.ge.f32.partialorder %v740_v10, 0.0  ;;  %v756_v13 = vmul.f32 0.2, %v740_v10  ;;  %v693_v62 = vmul.f32 %v664_v9, %v621_v60 }
 0x22f   :  { %v764_v14 = vsel %vm748_vm2, %v740_v10, %v756_v13  ;;  %v741_v18 = vadd.f32 %v712_v56, %v693_v62 }
 0x230   :  { %v780_v20 = vmul.f32 %v772_v12, %v764_v14  ;;  %v669_v21 = vpop.permute.xlu1 %668  ;;  %v778_v12 = vld [vmem:[%s1411_s4 + $0x38] sm:$0xff] }
 0x231   :  { %vm749_vm3 = vcmp.ge.f32.partialorder %v741_v18, 0.0  ;;  %v757_v23 = vmul.f32 0.2, %v741_v18  ;;  %v694_v22 = vmul.f32 %v669_v21, %v622_v19 }
 0x232   :  { %v788_v25 = vsel %vm522_vm0, %v780_v20, 0.0 }
 0x233   :  { %v789_v26 = vadd.f32 %v788_v25, %v787_v24  ;;  %v765_v27 = vsel %vm749_vm3, %v741_v18, %v757_v23  ;;  %v742_v28 = vadd.f32 %v717_v58, %v694_v22  ;;  %v808_v23 = vld [vmem:[%s1412_s5] sm:$0x3] }
 0x234   :  { %v781_v17 = vmul.f32 %v773_v15, %v765_v27  ;;  %v674_v30 = vpop.permute.xlu1 %673 }
 0x235   :  { %vm750_vm4 = vcmp.ge.f32.partialorder %v742_v28, 0.0  ;;  %v758_v32 = vmul.f32 0.2, %v742_v28  ;;  %v695_v33 = vmul.f32 %v674_v30, %v623_v29 }
 0x236   :  { %v790_v34 = vsel %vm522_vm0, %v781_v17, 0.0 }
 0x237   :  { %v791_v36 = vadd.f32 %v790_v34, %v789_v26  ;;  %v766_v38 = vsel %vm750_vm4, %v742_v28, %v758_v32  ;;  %v743_v39 = vadd.f32 %v722_v1, %v695_v33 }
 0x238   :  { %v782_v42 = vmul.f32 %v774_v31, %v766_v38  ;;  %v727_v43 = vpop.permute.xlu1 %726  ;;  %v679_v35 = vpop.permute.xlu0 %678 }
 0x239   :  { %vm751_vm5 = vcmp.ge.f32.partialorder %v743_v39, 0.0  ;;  %v759_v44 = vmul.f32 0.2, %v743_v39  ;;  %v696_v45 = vmul.f32 %v679_v35, %v624_v41 }
 0x23a   :  { %v792_v46 = vsel %vm522_vm0, %v782_v42, 0.0 }
 0x23b   :  { %v793_v47 = vadd.f32 %v792_v46, %v791_v36  ;;  %v767_v48 = vsel %vm751_vm5, %v743_v39, %v759_v44  ;;  %v744_v49 = vadd.f32 %v727_v43, %v696_v45 }
 0x23c   :  { %v783_v52 = vmul.f32 %v775_v40, %v767_v48  ;;  %v684_v37 = vpop.permute.xlu0 %683  ;;  %v732_v58 = vpop.permute.xlu1 %731 }
 0x23d   :  { %vm752_vm6 = vcmp.ge.f32.partialorder %v744_v49, 0.0  ;;  %v760_v53 = vmul.f32 0.2, %v744_v49  ;;  %v697_v54 = vmul.f32 %v684_v37, %v625_v51 }
 0x23e   :  { %v794_v56 = vsel %vm522_vm0, %v783_v52, 0.0 }
 0x23f   :  { %v795_v59 = vadd.f32 %v794_v56, %v793_v47  ;;  %v768_v61 = vsel %vm752_vm6, %v744_v49, %v760_v53  ;;  %v745_v0 = vadd.f32 %v732_v58, %v697_v54 }
 0x240   :  { %v784_v1 = vmul.f32 %v776_v50, %v768_v61  ;;  %v689_v2 = vpop.permute.xlu0 %688 }
 0x241   :  { %vm753_vm7 = vcmp.ge.f32.partialorder %v745_v0, 0.0  ;;  %v761_v63 = vmul.f32 0.2, %v745_v0  ;;  %v698_v7 = vmul.f32 %v689_v2, %v626_v3 }
 0x242   :  { %v796_v4 = vsel %vm522_vm0, %v784_v1, 0.0 }
 0x243   :  { %v797_v5 = vadd.f32 %v796_v4, %v795_v59  ;;  %v769_v6 = vsel %vm753_vm7, %v745_v0, %v761_v63 }
 0x244   :  { %v785_v8 = vmul.f32 %v777_v55, %v769_v6  ;;  %v737_v10 = vpop.permute.xlu0 %736 }
 0x245   :  { %v746_v60 = vadd.f32 %v737_v10, %v698_v7 }
 0x246   :  { %v798_v9 = vsel %vm522_vm0, %v785_v8, 0.0 }
 0x247   :  { %v799_v13 = vadd.f32 %v798_v9, %v797_v5  ;;  %vm754_vm8 = vcmp.ge.f32.partialorder %v746_v60, 0.0  ;;  %v762_v62 = vmul.f32 0.2, %v746_v60 }
 0x249   :  { %v770_v16 = vsel %vm754_vm8, %v746_v60, %v762_v62 }
 0x24a   :  { %v786_v14 = vmul.f32 %v778_v12, %v770_v16 }
 0x24c   :  { %v800_v57 = vsel %vm522_vm0, %v786_v14, 0.0 }
 0x24d   :  { %v801_v11 = vadd.f32 %v800_v57, %v799_v13 }
 0x24f   :  { %v802_v18 = vrot.slane %v801_v11, 4 }
 0x251   :  { %v803_v19 = vadd.f32 %v802_v18, %v801_v11 }
 0x253   :  { %v804_v20 = vrot.slane %v803_v19, 2 }
 0x255   :  { %v805_v21 = vadd.f32 %v804_v20, %v803_v19 }
 0x257   :  { %v806_v15 = vrot.slane %v805_v21, 1 }
 0x259   :  { %v807_v22 = vadd.f32 %v806_v15, %v805_v21 }
 0x25b   :  { %v809_v24 = vmul.f32 %v808_v23, %v807_v22 }
 0x25d   :  { %v811_v25 = vsel %vm810_vm9, %v809_v24, 0.0 }
 0x25e   :  { %812 = vadd.xlane.f32.xlu1 %v811_v25 }
 0x2eb   :  { %v813_v26 = vpop.xlane.xlu1 %812 }
 0x2ec   :  { %v814_v27 = vand.u32 2147483647, %v813_v26  ;;  %vm818_vm11 = vcmp.ge.f32.partialorder %v813_v26, 0.0 }
 0x2ee   :  { %v815_v28 = vsub.f32 0.0, %v814_v27 }
 0x2f0   :  { %v816_v29 = vmul.f32 1.442695, %v815_v28 }
 0x2f2   :  { %1033 = vpow2.f32 %v816_v29 }
 0x2fc   :  { %v1034_v17 = vpop.eup %1033 }
 0x2fd   :  { %v819_v30 = vadd.f32 1.0, %v1034_v17 }
 0x2ff   :  { %1035 = vrcp.f32 %v819_v30 }
 0x309   :  { %v1036_v31 = vpop.eup %1035 }
 0x30a   :  { %v822_v32 = vmul.f32 %v1036_v31, %v1034_v17 }
 0x30c   :  { %v823_v33 = vsel %vm818_vm11, %v1036_v31, %v822_v32 }
 0x30d   :  { %825 = vst.msk [vmem:[%s1413_s6] sm:$0x3] %vm824_vm10, %v823_v33 }

</bundles_post_ra>
